<compile_context>
chip_gen: v7x
topology: tpu7x:2x2x1
jax: 0.10.0
libtpu: 0.0.40
codegen_flags: <defaults>
</compile_context>

<pallas_src>
import functools

import jax
import jax.numpy as jnp
from jax.experimental import pallas as pl
from jax.experimental.pallas import tpu as pltpu


def _lstmf_kernel(x_ref,      # (T*BT, n_input)   time-major, batch-tile minor
                  wenc_ref,   # (n_input, F)       encoder weight^T
                  benc_ref,   # (1, F)             encoder bias
                  wih_ref,    # (L, F, 4H)         LSTM input weights^T (F == H for l>0)
                  whh_ref,    # (L, H, 4H)         LSTM hidden weights^T
                  bl_ref,     # (L, 1, 4H)         LSTM bias (b_ih + b_hh)
                  w1_ref,     # (H, 64)            linear_angle_1 weight^T
                  b1_ref,     # (1, 64)
                  w2_ref,     # (64, n_output)     linear_angle_2 weight^T
                  b2_ref,     # (1, n_output)
                  out_ref,    # (BT, n_output)
                  *, seq_len, batch_tile):
    T, BT = seq_len, batch_tile
    L = whh_ref.shape[0]
    H4 = whh_ref.shape[-1]
    H = H4 // 4
    f32 = jnp.float32

    # ---- hoisted loop-invariant operands (vreg/VMEM resident) ----
    wih = [wih_ref[l] for l in range(L)]                       # (F/H, 4H)
    whh = [whh_ref[l] for l in range(L)]                       # (H, 4H)
    # pre-broadcast biases once (layers > 0); layer-0 bias folded into prepass
    bias_hi = [jnp.broadcast_to(bl_ref[l], (BT, H4)) for l in range(1, L)]

    # ---- prepass: encoder + layer-0 input projection for ALL timesteps ----
    feat = jnp.maximum(
        jnp.dot(x_ref[...], wenc_ref[...], preferred_element_type=f32)
        + benc_ref[...], 0.0)                                  # (T*BT, F)
    gx0 = jnp.dot(feat, wih[0], preferred_element_type=f32) + bl_ref[0]  # (T*BT, 4H)

    # ---- recurrence: state kept in registers, time loop statically unrolled ----
    h = [jnp.zeros((BT, H), f32) for _ in range(L)]
    c = [jnp.zeros((BT, H), f32) for _ in range(L)]

    def lstm_cell(gates, c_prev):
        sig = jax.nn.sigmoid(gates)          # one dense EUP pass over 4H lanes
        tnh = jnp.tanh(gates)                # one dense EUP pass over 4H lanes
        i_g = sig[:, 0 * H:1 * H]
        f_g = sig[:, 1 * H:2 * H]
        g_g = tnh[:, 2 * H:3 * H]
        o_g = sig[:, 3 * H:4 * H]
        c_new = f_g * c_prev + i_g * g_g
        h_new = o_g * jnp.tanh(c_new)
        return h_new, c_new

    for t in range(T):                       # static unroll (T small & fixed)
        # layer 0: x-projection precomputed; only the hidden matmul is serial
        gates0 = (gx0[t * BT:(t + 1) * BT, :]
                  + jnp.dot(h[0], whh[0], preferred_element_type=f32))
        h[0], c[0] = lstm_cell(gates0, c[0])
        # stacked layers
        for l in range(1, L):
            gates = (jnp.dot(h[l - 1], wih[l], preferred_element_type=f32)
                     + jnp.dot(h[l], whh[l], preferred_element_type=f32)
                     + bias_hi[l - 1])
            h[l], c[l] = lstm_cell(gates, c[l])

    # ---- head: last timestep of top layer ----
    a1 = jnp.maximum(
        jnp.dot(h[L - 1], w1_ref[...], preferred_element_type=f32) + b1_ref[...],
        0.0)                                                   # (BT, 64)
    out = jnp.dot(a1, w2_ref[...], preferred_element_type=f32) + b2_ref[...]
    out_ref[...] = out.astype(out_ref.dtype)


def lstmf_forward(x_btf, params, *, batch_tile=8):
    """x_btf: (B, T, n_input) batch-first like PyTorch; returns (B, n_output)."""
    B, T, n_input = x_btf.shape
    L, H, H4 = params["whh_t"].shape
    assert H4 == 4 * H
    n_output = params["w2_t"].shape[-1]
    if L > 1:
        # stacked-weight layout requires feature_dim == n_hidden for layers > 0
        assert params["wih_t"].shape[1] == H, "feature_dim must equal n_hidden for L > 1"

    # pad batch to a multiple of the sublane-aligned batch tile
    BT = batch_tile
    B_pad = ((B + BT - 1) // BT) * BT
    nb = B_pad // BT
    x_pad = jnp.pad(x_btf, ((0, B_pad - B), (0, 0), (0, 0)))

    # wrapper-side layout plumbing: per batch-tile, rows ordered [t major, j minor]
    # x_tiles[b, t*BT + j, :] = x_pad[b*BT + j, t, :]
    x_tiles = (x_pad.reshape(nb, BT, T, n_input)
               .transpose(0, 2, 1, 3)
               .reshape(nb, T * BT, n_input))

    inputs = (
        x_tiles,
        params["wenc_t"], params["benc"],
        params["wih_t"], params["whh_t"], params["bl"],
        params["w1_t"], params["b1"],
        params["w2_t"], params["b2"],
    )

    def full_spec(arr):
        return pl.BlockSpec(arr.shape, lambda b: (0,) * arr.ndim)

    in_specs = [pl.BlockSpec((None, T * BT, n_input), lambda b: (b, 0, 0))]
    in_specs += [full_spec(a) for a in inputs[1:]]
    out_spec = pl.BlockSpec((BT, n_output), lambda b: (b, 0))

    kernel = functools.partial(_lstmf_kernel, seq_len=T, batch_tile=BT)

    out = pl.pallas_call(
        kernel,
        out_shape=jax.ShapeDtypeStruct((B_pad, n_output), jnp.float32),
        grid=(nb,),
        in_specs=in_specs,
        out_specs=out_spec,
        compiler_params=pltpu.CompilerParams(
            dimension_semantics=("parallel",)),
    )(*inputs)
    return out[:B]


def _init_params(key, n_input, n_hidden, n_rnn_layer, n_output, feature_dim=32):
    assert feature_dim == n_hidden, "stacked LSTM weights assume feature_dim == n_hidden"
    ks = jax.random.split(key, 12)
    s = 0.1
    wenc = s * jax.random.normal(ks[0], (feature_dim, n_input), jnp.float32)
    benc = s * jax.random.normal(ks[1], (feature_dim,), jnp.float32)
    wih = s * jax.random.normal(ks[2], (n_rnn_layer, 4 * n_hidden, feature_dim), jnp.float32)
    whh = s * jax.random.normal(ks[3], (n_rnn_layer, 4 * n_hidden, n_hidden), jnp.float32)
    bih = s * jax.random.normal(ks[4], (n_rnn_layer, 4 * n_hidden), jnp.float32)
    bhh = s * jax.random.normal(ks[5], (n_rnn_layer, 4 * n_hidden), jnp.float32)
    w1 = s * jax.random.normal(ks[6], (64, n_hidden), jnp.float32)
    b1 = s * jax.random.normal(ks[7], (64,), jnp.float32)
    w2 = s * jax.random.normal(ks[8], (n_output, 64), jnp.float32)
    b2 = s * jax.random.normal(ks[9], (n_output,), jnp.float32)
    return {
        "wenc_t": wenc.T,                                  # (n_input, F)
        "benc": benc[None, :],                             # (1, F)
        "wih_t": jnp.transpose(wih, (0, 2, 1)),            # (L, F, 4H)
        "whh_t": jnp.transpose(whh, (0, 2, 1)),            # (L, H, 4H)
        "bl": (bih + bhh)[:, None, :],                     # (L, 1, 4H)
        "w1_t": w1.T,                                      # (H, 64)
        "b1": b1[None, :],                                 # (1, 64)
        "w2_t": w2.T,                                      # (64, n_output)
        "b2": b2[None, :],                                 # (1, n_output)
    }


def _reference(x_btf, params):
    """Pure-JAX reference matching PyTorch LSTMF.forward semantics."""
    from jax import lax
    L, _, H4 = params["whh_t"].shape
    H = H4 // 4
    B = x_btf.shape[0]
    feat = jax.nn.relu(x_btf @ params["wenc_t"] + params["benc"])   # (B, T, F)

    h0 = jnp.zeros((L, B, H), jnp.float32)
    c0 = jnp.zeros((L, B, H), jnp.float32)

    def step(carry, x_t):
        h, c = carry
        inp = x_t
        hs, cs = [], []
        for l in range(L):
            gates = inp @ params["wih_t"][l] + h[l] @ params["whh_t"][l] + params["bl"][l]
            i_g = jax.nn.sigmoid(gates[:, 0 * H:1 * H])
            f_g = jax.nn.sigmoid(gates[:, 1 * H:2 * H])
            g_g = jnp.tanh(gates[:, 2 * H:3 * H])
            o_g = jax.nn.sigmoid(gates[:, 3 * H:4 * H])
            cn = f_g * c[l] + i_g * g_g
            hn = o_g * jnp.tanh(cn)
            hs.append(hn)
            cs.append(cn)
            inp = hn
        return (jnp.stack(hs), jnp.stack(cs)), inp

    (_, _), ys = lax.scan(step, (h0, c0), jnp.transpose(feat, (1, 0, 2)))
    last = ys[-1]                                                  # (B, H)
    a = jax.nn.relu(last @ params["w1_t"] + params["b1"])
    return a @ params["w2_t"] + params["b2"]


if __name__ == "__main__":
    # small shapes consistent with the module
    B, T = 2, 8
    n_input, n_hidden, n_rnn_layer, n_output = 16, 32, 2, 4

    key = jax.random.PRNGKey(0)
    kx, kp = jax.random.split(key)
    x = jax.random.normal(kx, (B, T, n_input), jnp.float32)
    params = _init_params(kp, n_input, n_hidden, n_rnn_layer, n_output)

    out = lstmf_forward(x, params)
    out = jax.block_until_ready(out)

    ref = _reference(x, params)
    assert out.shape == (B, n_output)
    assert jnp.max(jnp.abs(out - ref)) < 2e-4, "mismatch vs pure-JAX reference"

    print("KERNEL_OK")
</pallas_src>

<mosaic_0001>
module attributes {stable_mosaic.version = 11 : i64} {
  func.func @_lstmf_kernel(%arg0: i32, %arg1: memref<1x64x16xf32, #tpu.memory_space<vmem>>, %arg2: memref<16x32xf32, #tpu.memory_space<vmem>>, %arg3: memref<1x32xf32, #tpu.memory_space<vmem>>, %arg4: memref<2x32x128xf32, #tpu.memory_space<vmem>>, %arg5: memref<2x32x128xf32, #tpu.memory_space<vmem>>, %arg6: memref<2x1x128xf32, #tpu.memory_space<vmem>>, %arg7: memref<32x64xf32, #tpu.memory_space<vmem>>, %arg8: memref<1x64xf32, #tpu.memory_space<vmem>>, %arg9: memref<64x4xf32, #tpu.memory_space<vmem>>, %arg10: memref<1x4xf32, #tpu.memory_space<vmem>>, %arg11: memref<8x4xf32, #tpu.memory_space<vmem>>) attributes {dimension_semantics = [#tpu.dimension_semantics<parallel>], iteration_bounds = array<i64: 1>, scalar_prefetch = 0 : i64, scratch_operands = 0 : i64, tpu.core_type = #tpu.core_type<tc>, window_params = [{transform_indices = @transform_0, window_bounds = array<i64: 1, 64, 16>}, {pipeline_mode = #tpu.pipeline_mode<synchronous>, transform_indices = @transform_1, window_bounds = array<i64: 16, 32>}, {pipeline_mode = #tpu.pipeline_mode<synchronous>, transform_indices = @transform_2, window_bounds = array<i64: 1, 32>}, {pipeline_mode = #tpu.pipeline_mode<synchronous>, transform_indices = @transform_3, window_bounds = array<i64: 2, 32, 128>}, {pipeline_mode = #tpu.pipeline_mode<synchronous>, transform_indices = @transform_4, window_bounds = array<i64: 2, 32, 128>}, {pipeline_mode = #tpu.pipeline_mode<synchronous>, transform_indices = @transform_5, window_bounds = array<i64: 2, 1, 128>}, {pipeline_mode = #tpu.pipeline_mode<synchronous>, transform_indices = @transform_6, window_bounds = array<i64: 32, 64>}, {pipeline_mode = #tpu.pipeline_mode<synchronous>, transform_indices = @transform_7, window_bounds = array<i64: 1, 64>}, {pipeline_mode = #tpu.pipeline_mode<synchronous>, transform_indices = @transform_8, window_bounds = array<i64: 64, 4>}, {pipeline_mode = #tpu.pipeline_mode<synchronous>, transform_indices = @transform_9, window_bounds = array<i64: 1, 4>}, {transform_indices = @transform_10, window_bounds = array<i64: 8, 4>}]} {
    %c0 = arith.constant 0 : index
    %c0_0 = arith.constant 0 : index
    %c0_1 = arith.constant 0 : index
    %0 = vector.load %arg4[%c0, %c0_0, %c0_1] : memref<2x32x128xf32, #tpu.memory_space<vmem>>, vector<1x32x128xf32>
    %1 = vector.shape_cast %0 : vector<1x32x128xf32> to vector<32x128xf32>
    %c1 = arith.constant 1 : index
    %c0_2 = arith.constant 0 : index
    %c0_3 = arith.constant 0 : index
    %2 = vector.load %arg4[%c1, %c0_2, %c0_3] : memref<2x32x128xf32, #tpu.memory_space<vmem>>, vector<1x32x128xf32>
    %3 = vector.shape_cast %2 : vector<1x32x128xf32> to vector<32x128xf32>
    %c0_4 = arith.constant 0 : index
    %c0_5 = arith.constant 0 : index
    %c0_6 = arith.constant 0 : index
    %4 = vector.load %arg5[%c0_4, %c0_5, %c0_6] : memref<2x32x128xf32, #tpu.memory_space<vmem>>, vector<1x32x128xf32>
    %5 = vector.shape_cast %4 : vector<1x32x128xf32> to vector<32x128xf32>
    %c1_7 = arith.constant 1 : index
    %c0_8 = arith.constant 0 : index
    %c0_9 = arith.constant 0 : index
    %6 = vector.load %arg5[%c1_7, %c0_8, %c0_9] : memref<2x32x128xf32, #tpu.memory_space<vmem>>, vector<1x32x128xf32>
    %7 = vector.shape_cast %6 : vector<1x32x128xf32> to vector<32x128xf32>
    %c1_10 = arith.constant 1 : index
    %c0_11 = arith.constant 0 : index
    %c0_12 = arith.constant 0 : index
    %8 = vector.load %arg6[%c1_10, %c0_11, %c0_12] : memref<2x1x128xf32, #tpu.memory_space<vmem>>, vector<1x1x128xf32>
    %9 = vector.shape_cast %8 : vector<1x1x128xf32> to vector<1x128xf32>
    %10 = vector.shape_cast %9 : vector<1x128xf32> to vector<1x128xf32>
    %11 = vector.broadcast %10 : vector<1x128xf32> to vector<8x128xf32>
    %c0_13 = arith.constant 0 : index
    %c0_14 = arith.constant 0 : index
    %c0_15 = arith.constant 0 : index
    %12 = vector.load %arg1[%c0_13, %c0_14, %c0_15] : memref<1x64x16xf32, #tpu.memory_space<vmem>>, vector<1x64x16xf32>
    %13 = vector.shape_cast %12 : vector<1x64x16xf32> to vector<64x16xf32>
    %c0_16 = arith.constant 0 : index
    %c0_17 = arith.constant 0 : index
    %14 = vector.load %arg2[%c0_16, %c0_17] : memref<16x32xf32, #tpu.memory_space<vmem>>, vector<16x32xf32>
    %cst = arith.constant dense<0.000000e+00> : vector<64x32xf32>
    %15 = tpu.matmul %13, %14, %cst {dimension_numbers = #tpu.dot_dimension_numbers<[1], [0], [0], [1], [0, 0, 1, 1], [], []>} : vector<64x16xf32>, vector<16x32xf32>, vector<64x32xf32> -> vector<64x32xf32>
    %c0_18 = arith.constant 0 : index
    %c0_19 = arith.constant 0 : index
    %16 = vector.load %arg3[%c0_18, %c0_19] : memref<1x32xf32, #tpu.memory_space<vmem>>, vector<1x32xf32>
    %17 = vector.broadcast %16 : vector<1x32xf32> to vector<64x32xf32>
    %18 = arith.addf %15, %17 : vector<64x32xf32>
    %cst_20 = arith.constant 0.000000e+00 : f32
    %19 = vector.broadcast %cst_20 : f32 to vector<64x32xf32>
    %20 = arith.maximumf %18, %19 : vector<64x32xf32>
    %cst_21 = arith.constant dense<0.000000e+00> : vector<64x128xf32>
    %21 = tpu.matmul %20, %1, %cst_21 {dimension_numbers = #tpu.dot_dimension_numbers<[1], [0], [0], [1], [0, 0, 1, 1], [], []>} : vector<64x32xf32>, vector<32x128xf32>, vector<64x128xf32> -> vector<64x128xf32>
    %c0_22 = arith.constant 0 : index
    %c0_23 = arith.constant 0 : index
    %c0_24 = arith.constant 0 : index
    %22 = vector.load %arg6[%c0_22, %c0_23, %c0_24] : memref<2x1x128xf32, #tpu.memory_space<vmem>>, vector<1x1x128xf32>
    %23 = vector.shape_cast %22 : vector<1x1x128xf32> to vector<1x128xf32>
    %24 = vector.broadcast %23 : vector<1x128xf32> to vector<64x128xf32>
    %25 = arith.addf %21, %24 : vector<64x128xf32>
    %cst_25 = arith.constant 0.000000e+00 : f32
    %26 = vector.broadcast %cst_25 : f32 to vector<8x32xf32>
    %cst_26 = arith.constant 0.000000e+00 : f32
    %27 = vector.broadcast %cst_26 : f32 to vector<8x32xf32>
    %cst_27 = arith.constant 0.000000e+00 : f32
    %28 = vector.broadcast %cst_27 : f32 to vector<8x32xf32>
    %cst_28 = arith.constant 0.000000e+00 : f32
    %29 = vector.broadcast %cst_28 : f32 to vector<8x32xf32>
    %30 = vector.extract_strided_slice %25 {offsets = [0, 0], sizes = [8, 128], strides = [1, 1]} : vector<64x128xf32> to vector<8x128xf32>
    %cst_29 = arith.constant dense<0.000000e+00> : vector<8x128xf32>
    %31 = tpu.matmul %26, %5, %cst_29 {dimension_numbers = #tpu.dot_dimension_numbers<[1], [0], [0], [1], [0, 0, 1, 1], [], []>} : vector<8x32xf32>, vector<32x128xf32>, vector<8x128xf32> -> vector<8x128xf32>
    %32 = arith.addf %30, %31 : vector<8x128xf32>
    %33 = arith.negf %32 : vector<8x128xf32>
    %34 = math.exp %33 : vector<8x128xf32>
    %cst_30 = arith.constant 1.000000e+00 : f32
    %35 = vector.broadcast %cst_30 : f32 to vector<8x128xf32>
    %36 = arith.addf %35, %34 : vector<8x128xf32>
    %37 = arith.divf %35, %36 : vector<8x128xf32>
    %38 = math.tanh %32 : vector<8x128xf32>
    %39 = vector.extract_strided_slice %37 {offsets = [0, 0], sizes = [8, 32], strides = [1, 1]} : vector<8x128xf32> to vector<8x32xf32>
    %40 = vector.extract_strided_slice %37 {offsets = [0, 32], sizes = [8, 32], strides = [1, 1]} : vector<8x128xf32> to vector<8x32xf32>
    %41 = vector.extract_strided_slice %38 {offsets = [0, 64], sizes = [8, 32], strides = [1, 1]} : vector<8x128xf32> to vector<8x32xf32>
    %42 = vector.extract_strided_slice %37 {offsets = [0, 96], sizes = [8, 32], strides = [1, 1]} : vector<8x128xf32> to vector<8x32xf32>
    %43 = arith.mulf %40, %28 : vector<8x32xf32>
    %44 = arith.mulf %39, %41 : vector<8x32xf32>
    %45 = arith.addf %43, %44 : vector<8x32xf32>
    %46 = math.tanh %45 : vector<8x32xf32>
    %47 = arith.mulf %42, %46 : vector<8x32xf32>
    %cst_31 = arith.constant dense<0.000000e+00> : vector<8x128xf32>
    %48 = tpu.matmul %47, %3, %cst_31 {dimension_numbers = #tpu.dot_dimension_numbers<[1], [0], [0], [1], [0, 0, 1, 1], [], []>} : vector<8x32xf32>, vector<32x128xf32>, vector<8x128xf32> -> vector<8x128xf32>
    %cst_32 = arith.constant dense<0.000000e+00> : vector<8x128xf32>
    %49 = tpu.matmul %27, %7, %cst_32 {dimension_numbers = #tpu.dot_dimension_numbers<[1], [0], [0], [1], [0, 0, 1, 1], [], []>} : vector<8x32xf32>, vector<32x128xf32>, vector<8x128xf32> -> vector<8x128xf32>
    %50 = arith.addf %48, %49 : vector<8x128xf32>
    %51 = arith.addf %50, %11 : vector<8x128xf32>
    %52 = arith.negf %51 : vector<8x128xf32>
    %53 = math.exp %52 : vector<8x128xf32>
    %cst_33 = arith.constant 1.000000e+00 : f32
    %54 = vector.broadcast %cst_33 : f32 to vector<8x128xf32>
    %55 = arith.addf %54, %53 : vector<8x128xf32>
    %56 = arith.divf %54, %55 : vector<8x128xf32>
    %57 = math.tanh %51 : vector<8x128xf32>
    %58 = vector.extract_strided_slice %56 {offsets = [0, 0], sizes = [8, 32], strides = [1, 1]} : vector<8x128xf32> to vector<8x32xf32>
    %59 = vector.extract_strided_slice %56 {offsets = [0, 32], sizes = [8, 32], strides = [1, 1]} : vector<8x128xf32> to vector<8x32xf32>
    %60 = vector.extract_strided_slice %57 {offsets = [0, 64], sizes = [8, 32], strides = [1, 1]} : vector<8x128xf32> to vector<8x32xf32>
    %61 = vector.extract_strided_slice %56 {offsets = [0, 96], sizes = [8, 32], strides = [1, 1]} : vector<8x128xf32> to vector<8x32xf32>
    %62 = arith.mulf %59, %29 : vector<8x32xf32>
    %63 = arith.mulf %58, %60 : vector<8x32xf32>
    %64 = arith.addf %62, %63 : vector<8x32xf32>
    %65 = math.tanh %64 : vector<8x32xf32>
    %66 = arith.mulf %61, %65 : vector<8x32xf32>
    %67 = vector.extract_strided_slice %25 {offsets = [8, 0], sizes = [8, 128], strides = [1, 1]} : vector<64x128xf32> to vector<8x128xf32>
    %cst_34 = arith.constant dense<0.000000e+00> : vector<8x128xf32>
    %68 = tpu.matmul %47, %5, %cst_34 {dimension_numbers = #tpu.dot_dimension_numbers<[1], [0], [0], [1], [0, 0, 1, 1], [], []>} : vector<8x32xf32>, vector<32x128xf32>, vector<8x128xf32> -> vector<8x128xf32>
    %69 = arith.addf %67, %68 : vector<8x128xf32>
    %70 = arith.negf %69 : vector<8x128xf32>
    %71 = math.exp %70 : vector<8x128xf32>
    %cst_35 = arith.constant 1.000000e+00 : f32
    %72 = vector.broadcast %cst_35 : f32 to vector<8x128xf32>
    %73 = arith.addf %72, %71 : vector<8x128xf32>
    %74 = arith.divf %72, %73 : vector<8x128xf32>
    %75 = math.tanh %69 : vector<8x128xf32>
    %76 = vector.extract_strided_slice %74 {offsets = [0, 0], sizes = [8, 32], strides = [1, 1]} : vector<8x128xf32> to vector<8x32xf32>
    %77 = vector.extract_strided_slice %74 {offsets = [0, 32], sizes = [8, 32], strides = [1, 1]} : vector<8x128xf32> to vector<8x32xf32>
    %78 = vector.extract_strided_slice %75 {offsets = [0, 64], sizes = [8, 32], strides = [1, 1]} : vector<8x128xf32> to vector<8x32xf32>
    %79 = vector.extract_strided_slice %74 {offsets = [0, 96], sizes = [8, 32], strides = [1, 1]} : vector<8x128xf32> to vector<8x32xf32>
    %80 = arith.mulf %77, %45 : vector<8x32xf32>
    %81 = arith.mulf %76, %78 : vector<8x32xf32>
    %82 = arith.addf %80, %81 : vector<8x32xf32>
    %83 = math.tanh %82 : vector<8x32xf32>
    %84 = arith.mulf %79, %83 : vector<8x32xf32>
    %cst_36 = arith.constant dense<0.000000e+00> : vector<8x128xf32>
    %85 = tpu.matmul %84, %3, %cst_36 {dimension_numbers = #tpu.dot_dimension_numbers<[1], [0], [0], [1], [0, 0, 1, 1], [], []>} : vector<8x32xf32>, vector<32x128xf32>, vector<8x128xf32> -> vector<8x128xf32>
    %cst_37 = arith.constant dense<0.000000e+00> : vector<8x128xf32>
    %86 = tpu.matmul %66, %7, %cst_37 {dimension_numbers = #tpu.dot_dimension_numbers<[1], [0], [0], [1], [0, 0, 1, 1], [], []>} : vector<8x32xf32>, vector<32x128xf32>, vector<8x128xf32> -> vector<8x128xf32>
    %87 = arith.addf %85, %86 : vector<8x128xf32>
    %88 = arith.addf %87, %11 : vector<8x128xf32>
    %89 = arith.negf %88 : vector<8x128xf32>
    %90 = math.exp %89 : vector<8x128xf32>
    %cst_38 = arith.constant 1.000000e+00 : f32
    %91 = vector.broadcast %cst_38 : f32 to vector<8x128xf32>
    %92 = arith.addf %91, %90 : vector<8x128xf32>
    %93 = arith.divf %91, %92 : vector<8x128xf32>
    %94 = math.tanh %88 : vector<8x128xf32>
    %95 = vector.extract_strided_slice %93 {offsets = [0, 0], sizes = [8, 32], strides = [1, 1]} : vector<8x128xf32> to vector<8x32xf32>
    %96 = vector.extract_strided_slice %93 {offsets = [0, 32], sizes = [8, 32], strides = [1, 1]} : vector<8x128xf32> to vector<8x32xf32>
    %97 = vector.extract_strided_slice %94 {offsets = [0, 64], sizes = [8, 32], strides = [1, 1]} : vector<8x128xf32> to vector<8x32xf32>
    %98 = vector.extract_strided_slice %93 {offsets = [0, 96], sizes = [8, 32], strides = [1, 1]} : vector<8x128xf32> to vector<8x32xf32>
    %99 = arith.mulf %96, %64 : vector<8x32xf32>
    %100 = arith.mulf %95, %97 : vector<8x32xf32>
    %101 = arith.addf %99, %100 : vector<8x32xf32>
    %102 = math.tanh %101 : vector<8x32xf32>
    %103 = arith.mulf %98, %102 : vector<8x32xf32>
    %104 = vector.extract_strided_slice %25 {offsets = [16, 0], sizes = [8, 128], strides = [1, 1]} : vector<64x128xf32> to vector<8x128xf32>
    %cst_39 = arith.constant dense<0.000000e+00> : vector<8x128xf32>
    %105 = tpu.matmul %84, %5, %cst_39 {dimension_numbers = #tpu.dot_dimension_numbers<[1], [0], [0], [1], [0, 0, 1, 1], [], []>} : vector<8x32xf32>, vector<32x128xf32>, vector<8x128xf32> -> vector<8x128xf32>
    %106 = arith.addf %104, %105 : vector<8x128xf32>
    %107 = arith.negf %106 : vector<8x128xf32>
    %108 = math.exp %107 : vector<8x128xf32>
    %cst_40 = arith.constant 1.000000e+00 : f32
    %109 = vector.broadcast %cst_40 : f32 to vector<8x128xf32>
    %110 = arith.addf %109, %108 : vector<8x128xf32>
    %111 = arith.divf %109, %110 : vector<8x128xf32>
    %112 = math.tanh %106 : vector<8x128xf32>
    %113 = vector.extract_strided_slice %111 {offsets = [0, 0], sizes = [8, 32], strides = [1, 1]} : vector<8x128xf32> to vector<8x32xf32>
    %114 = vector.extract_strided_slice %111 {offsets = [0, 32], sizes = [8, 32], strides = [1, 1]} : vector<8x128xf32> to vector<8x32xf32>
    %115 = vector.extract_strided_slice %112 {offsets = [0, 64], sizes = [8, 32], strides = [1, 1]} : vector<8x128xf32> to vector<8x32xf32>
    %116 = vector.extract_strided_slice %111 {offsets = [0, 96], sizes = [8, 32], strides = [1, 1]} : vector<8x128xf32> to vector<8x32xf32>
    %117 = arith.mulf %114, %82 : vector<8x32xf32>
    %118 = arith.mulf %113, %115 : vector<8x32xf32>
    %119 = arith.addf %117, %118 : vector<8x32xf32>
    %120 = math.tanh %119 : vector<8x32xf32>
    %121 = arith.mulf %116, %120 : vector<8x32xf32>
    %cst_41 = arith.constant dense<0.000000e+00> : vector<8x128xf32>
    %122 = tpu.matmul %121, %3, %cst_41 {dimension_numbers = #tpu.dot_dimension_numbers<[1], [0], [0], [1], [0, 0, 1, 1], [], []>} : vector<8x32xf32>, vector<32x128xf32>, vector<8x128xf32> -> vector<8x128xf32>
    %cst_42 = arith.constant dense<0.000000e+00> : vector<8x128xf32>
    %123 = tpu.matmul %103, %7, %cst_42 {dimension_numbers = #tpu.dot_dimension_numbers<[1], [0], [0], [1], [0, 0, 1, 1], [], []>} : vector<8x32xf32>, vector<32x128xf32>, vector<8x128xf32> -> vector<8x128xf32>
    %124 = arith.addf %122, %123 : vector<8x128xf32>
    %125 = arith.addf %124, %11 : vector<8x128xf32>
    %126 = arith.negf %125 : vector<8x128xf32>
    %127 = math.exp %126 : vector<8x128xf32>
    %cst_43 = arith.constant 1.000000e+00 : f32
    %128 = vector.broadcast %cst_43 : f32 to vector<8x128xf32>
    %129 = arith.addf %128, %127 : vector<8x128xf32>
    %130 = arith.divf %128, %129 : vector<8x128xf32>
    %131 = math.tanh %125 : vector<8x128xf32>
    %132 = vector.extract_strided_slice %130 {offsets = [0, 0], sizes = [8, 32], strides = [1, 1]} : vector<8x128xf32> to vector<8x32xf32>
    %133 = vector.extract_strided_slice %130 {offsets = [0, 32], sizes = [8, 32], strides = [1, 1]} : vector<8x128xf32> to vector<8x32xf32>
    %134 = vector.extract_strided_slice %131 {offsets = [0, 64], sizes = [8, 32], strides = [1, 1]} : vector<8x128xf32> to vector<8x32xf32>
    %135 = vector.extract_strided_slice %130 {offsets = [0, 96], sizes = [8, 32], strides = [1, 1]} : vector<8x128xf32> to vector<8x32xf32>
    %136 = arith.mulf %133, %101 : vector<8x32xf32>
    %137 = arith.mulf %132, %134 : vector<8x32xf32>
    %138 = arith.addf %136, %137 : vector<8x32xf32>
    %139 = math.tanh %138 : vector<8x32xf32>
    %140 = arith.mulf %135, %139 : vector<8x32xf32>
    %141 = vector.extract_strided_slice %25 {offsets = [24, 0], sizes = [8, 128], strides = [1, 1]} : vector<64x128xf32> to vector<8x128xf32>
    %cst_44 = arith.constant dense<0.000000e+00> : vector<8x128xf32>
    %142 = tpu.matmul %121, %5, %cst_44 {dimension_numbers = #tpu.dot_dimension_numbers<[1], [0], [0], [1], [0, 0, 1, 1], [], []>} : vector<8x32xf32>, vector<32x128xf32>, vector<8x128xf32> -> vector<8x128xf32>
    %143 = arith.addf %141, %142 : vector<8x128xf32>
    %144 = arith.negf %143 : vector<8x128xf32>
    %145 = math.exp %144 : vector<8x128xf32>
    %cst_45 = arith.constant 1.000000e+00 : f32
    %146 = vector.broadcast %cst_45 : f32 to vector<8x128xf32>
    %147 = arith.addf %146, %145 : vector<8x128xf32>
    %148 = arith.divf %146, %147 : vector<8x128xf32>
    %149 = math.tanh %143 : vector<8x128xf32>
    %150 = vector.extract_strided_slice %148 {offsets = [0, 0], sizes = [8, 32], strides = [1, 1]} : vector<8x128xf32> to vector<8x32xf32>
    %151 = vector.extract_strided_slice %148 {offsets = [0, 32], sizes = [8, 32], strides = [1, 1]} : vector<8x128xf32> to vector<8x32xf32>
    %152 = vector.extract_strided_slice %149 {offsets = [0, 64], sizes = [8, 32], strides = [1, 1]} : vector<8x128xf32> to vector<8x32xf32>
    %153 = vector.extract_strided_slice %148 {offsets = [0, 96], sizes = [8, 32], strides = [1, 1]} : vector<8x128xf32> to vector<8x32xf32>
    %154 = arith.mulf %151, %119 : vector<8x32xf32>
    %155 = arith.mulf %150, %152 : vector<8x32xf32>
    %156 = arith.addf %154, %155 : vector<8x32xf32>
    %157 = math.tanh %156 : vector<8x32xf32>
    %158 = arith.mulf %153, %157 : vector<8x32xf32>
    %cst_46 = arith.constant dense<0.000000e+00> : vector<8x128xf32>
    %159 = tpu.matmul %158, %3, %cst_46 {dimension_numbers = #tpu.dot_dimension_numbers<[1], [0], [0], [1], [0, 0, 1, 1], [], []>} : vector<8x32xf32>, vector<32x128xf32>, vector<8x128xf32> -> vector<8x128xf32>
    %cst_47 = arith.constant dense<0.000000e+00> : vector<8x128xf32>
    %160 = tpu.matmul %140, %7, %cst_47 {dimension_numbers = #tpu.dot_dimension_numbers<[1], [0], [0], [1], [0, 0, 1, 1], [], []>} : vector<8x32xf32>, vector<32x128xf32>, vector<8x128xf32> -> vector<8x128xf32>
    %161 = arith.addf %159, %160 : vector<8x128xf32>
    %162 = arith.addf %161, %11 : vector<8x128xf32>
    %163 = arith.negf %162 : vector<8x128xf32>
    %164 = math.exp %163 : vector<8x128xf32>
    %cst_48 = arith.constant 1.000000e+00 : f32
    %165 = vector.broadcast %cst_48 : f32 to vector<8x128xf32>
    %166 = arith.addf %165, %164 : vector<8x128xf32>
    %167 = arith.divf %165, %166 : vector<8x128xf32>
    %168 = math.tanh %162 : vector<8x128xf32>
    %169 = vector.extract_strided_slice %167 {offsets = [0, 0], sizes = [8, 32], strides = [1, 1]} : vector<8x128xf32> to vector<8x32xf32>
    %170 = vector.extract_strided_slice %167 {offsets = [0, 32], sizes = [8, 32], strides = [1, 1]} : vector<8x128xf32> to vector<8x32xf32>
    %171 = vector.extract_strided_slice %168 {offsets = [0, 64], sizes = [8, 32], strides = [1, 1]} : vector<8x128xf32> to vector<8x32xf32>
    %172 = vector.extract_strided_slice %167 {offsets = [0, 96], sizes = [8, 32], strides = [1, 1]} : vector<8x128xf32> to vector<8x32xf32>
    %173 = arith.mulf %170, %138 : vector<8x32xf32>
    %174 = arith.mulf %169, %171 : vector<8x32xf32>
    %175 = arith.addf %173, %174 : vector<8x32xf32>
    %176 = math.tanh %175 : vector<8x32xf32>
    %177 = arith.mulf %172, %176 : vector<8x32xf32>
    %178 = vector.extract_strided_slice %25 {offsets = [32, 0], sizes = [8, 128], strides = [1, 1]} : vector<64x128xf32> to vector<8x128xf32>
    %cst_49 = arith.constant dense<0.000000e+00> : vector<8x128xf32>
    %179 = tpu.matmul %158, %5, %cst_49 {dimension_numbers = #tpu.dot_dimension_numbers<[1], [0], [0], [1], [0, 0, 1, 1], [], []>} : vector<8x32xf32>, vector<32x128xf32>, vector<8x128xf32> -> vector<8x128xf32>
    %180 = arith.addf %178, %179 : vector<8x128xf32>
    %181 = arith.negf %180 : vector<8x128xf32>
    %182 = math.exp %181 : vector<8x128xf32>
    %cst_50 = arith.constant 1.000000e+00 : f32
    %183 = vector.broadcast %cst_50 : f32 to vector<8x128xf32>
    %184 = arith.addf %183, %182 : vector<8x128xf32>
    %185 = arith.divf %183, %184 : vector<8x128xf32>
    %186 = math.tanh %180 : vector<8x128xf32>
    %187 = vector.extract_strided_slice %185 {offsets = [0, 0], sizes = [8, 32], strides = [1, 1]} : vector<8x128xf32> to vector<8x32xf32>
    %188 = vector.extract_strided_slice %185 {offsets = [0, 32], sizes = [8, 32], strides = [1, 1]} : vector<8x128xf32> to vector<8x32xf32>
    %189 = vector.extract_strided_slice %186 {offsets = [0, 64], sizes = [8, 32], strides = [1, 1]} : vector<8x128xf32> to vector<8x32xf32>
    %190 = vector.extract_strided_slice %185 {offsets = [0, 96], sizes = [8, 32], strides = [1, 1]} : vector<8x128xf32> to vector<8x32xf32>
    %191 = arith.mulf %188, %156 : vector<8x32xf32>
    %192 = arith.mulf %187, %189 : vector<8x32xf32>
    %193 = arith.addf %191, %192 : vector<8x32xf32>
    %194 = math.tanh %193 : vector<8x32xf32>
    %195 = arith.mulf %190, %194 : vector<8x32xf32>
    %cst_51 = arith.constant dense<0.000000e+00> : vector<8x128xf32>
    %196 = tpu.matmul %195, %3, %cst_51 {dimension_numbers = #tpu.dot_dimension_numbers<[1], [0], [0], [1], [0, 0, 1, 1], [], []>} : vector<8x32xf32>, vector<32x128xf32>, vector<8x128xf32> -> vector<8x128xf32>
    %cst_52 = arith.constant dense<0.000000e+00> : vector<8x128xf32>
    %197 = tpu.matmul %177, %7, %cst_52 {dimension_numbers = #tpu.dot_dimension_numbers<[1], [0], [0], [1], [0, 0, 1, 1], [], []>} : vector<8x32xf32>, vector<32x128xf32>, vector<8x128xf32> -> vector<8x128xf32>
    %198 = arith.addf %196, %197 : vector<8x128xf32>
    %199 = arith.addf %198, %11 : vector<8x128xf32>
    %200 = arith.negf %199 : vector<8x128xf32>
    %201 = math.exp %200 : vector<8x128xf32>
    %cst_53 = arith.constant 1.000000e+00 : f32
    %202 = vector.broadcast %cst_53 : f32 to vector<8x128xf32>
    %203 = arith.addf %202, %201 : vector<8x128xf32>
    %204 = arith.divf %202, %203 : vector<8x128xf32>
    %205 = math.tanh %199 : vector<8x128xf32>
    %206 = vector.extract_strided_slice %204 {offsets = [0, 0], sizes = [8, 32], strides = [1, 1]} : vector<8x128xf32> to vector<8x32xf32>
    %207 = vector.extract_strided_slice %204 {offsets = [0, 32], sizes = [8, 32], strides = [1, 1]} : vector<8x128xf32> to vector<8x32xf32>
    %208 = vector.extract_strided_slice %205 {offsets = [0, 64], sizes = [8, 32], strides = [1, 1]} : vector<8x128xf32> to vector<8x32xf32>
    %209 = vector.extract_strided_slice %204 {offsets = [0, 96], sizes = [8, 32], strides = [1, 1]} : vector<8x128xf32> to vector<8x32xf32>
    %210 = arith.mulf %207, %175 : vector<8x32xf32>
    %211 = arith.mulf %206, %208 : vector<8x32xf32>
    %212 = arith.addf %210, %211 : vector<8x32xf32>
    %213 = math.tanh %212 : vector<8x32xf32>
    %214 = arith.mulf %209, %213 : vector<8x32xf32>
    %215 = vector.extract_strided_slice %25 {offsets = [40, 0], sizes = [8, 128], strides = [1, 1]} : vector<64x128xf32> to vector<8x128xf32>
    %cst_54 = arith.constant dense<0.000000e+00> : vector<8x128xf32>
    %216 = tpu.matmul %195, %5, %cst_54 {dimension_numbers = #tpu.dot_dimension_numbers<[1], [0], [0], [1], [0, 0, 1, 1], [], []>} : vector<8x32xf32>, vector<32x128xf32>, vector<8x128xf32> -> vector<8x128xf32>
    %217 = arith.addf %215, %216 : vector<8x128xf32>
    %218 = arith.negf %217 : vector<8x128xf32>
    %219 = math.exp %218 : vector<8x128xf32>
    %cst_55 = arith.constant 1.000000e+00 : f32
    %220 = vector.broadcast %cst_55 : f32 to vector<8x128xf32>
    %221 = arith.addf %220, %219 : vector<8x128xf32>
    %222 = arith.divf %220, %221 : vector<8x128xf32>
    %223 = math.tanh %217 : vector<8x128xf32>
    %224 = vector.extract_strided_slice %222 {offsets = [0, 0], sizes = [8, 32], strides = [1, 1]} : vector<8x128xf32> to vector<8x32xf32>
    %225 = vector.extract_strided_slice %222 {offsets = [0, 32], sizes = [8, 32], strides = [1, 1]} : vector<8x128xf32> to vector<8x32xf32>
    %226 = vector.extract_strided_slice %223 {offsets = [0, 64], sizes = [8, 32], strides = [1, 1]} : vector<8x128xf32> to vector<8x32xf32>
    %227 = vector.extract_strided_slice %222 {offsets = [0, 96], sizes = [8, 32], strides = [1, 1]} : vector<8x128xf32> to vector<8x32xf32>
    %228 = arith.mulf %225, %193 : vector<8x32xf32>
    %229 = arith.mulf %224, %226 : vector<8x32xf32>
    %230 = arith.addf %228, %229 : vector<8x32xf32>
    %231 = math.tanh %230 : vector<8x32xf32>
    %232 = arith.mulf %227, %231 : vector<8x32xf32>
    %cst_56 = arith.constant dense<0.000000e+00> : vector<8x128xf32>
    %233 = tpu.matmul %232, %3, %cst_56 {dimension_numbers = #tpu.dot_dimension_numbers<[1], [0], [0], [1], [0, 0, 1, 1], [], []>} : vector<8x32xf32>, vector<32x128xf32>, vector<8x128xf32> -> vector<8x128xf32>
    %cst_57 = arith.constant dense<0.000000e+00> : vector<8x128xf32>
    %234 = tpu.matmul %214, %7, %cst_57 {dimension_numbers = #tpu.dot_dimension_numbers<[1], [0], [0], [1], [0, 0, 1, 1], [], []>} : vector<8x32xf32>, vector<32x128xf32>, vector<8x128xf32> -> vector<8x128xf32>
    %235 = arith.addf %233, %234 : vector<8x128xf32>
    %236 = arith.addf %235, %11 : vector<8x128xf32>
    %237 = arith.negf %236 : vector<8x128xf32>
    %238 = math.exp %237 : vector<8x128xf32>
    %cst_58 = arith.constant 1.000000e+00 : f32
    %239 = vector.broadcast %cst_58 : f32 to vector<8x128xf32>
    %240 = arith.addf %239, %238 : vector<8x128xf32>
    %241 = arith.divf %239, %240 : vector<8x128xf32>
    %242 = math.tanh %236 : vector<8x128xf32>
    %243 = vector.extract_strided_slice %241 {offsets = [0, 0], sizes = [8, 32], strides = [1, 1]} : vector<8x128xf32> to vector<8x32xf32>
    %244 = vector.extract_strided_slice %241 {offsets = [0, 32], sizes = [8, 32], strides = [1, 1]} : vector<8x128xf32> to vector<8x32xf32>
    %245 = vector.extract_strided_slice %242 {offsets = [0, 64], sizes = [8, 32], strides = [1, 1]} : vector<8x128xf32> to vector<8x32xf32>
    %246 = vector.extract_strided_slice %241 {offsets = [0, 96], sizes = [8, 32], strides = [1, 1]} : vector<8x128xf32> to vector<8x32xf32>
    %247 = arith.mulf %244, %212 : vector<8x32xf32>
    %248 = arith.mulf %243, %245 : vector<8x32xf32>
    %249 = arith.addf %247, %248 : vector<8x32xf32>
    %250 = math.tanh %249 : vector<8x32xf32>
    %251 = arith.mulf %246, %250 : vector<8x32xf32>
    %252 = vector.extract_strided_slice %25 {offsets = [48, 0], sizes = [8, 128], strides = [1, 1]} : vector<64x128xf32> to vector<8x128xf32>
    %cst_59 = arith.constant dense<0.000000e+00> : vector<8x128xf32>
    %253 = tpu.matmul %232, %5, %cst_59 {dimension_numbers = #tpu.dot_dimension_numbers<[1], [0], [0], [1], [0, 0, 1, 1], [], []>} : vector<8x32xf32>, vector<32x128xf32>, vector<8x128xf32> -> vector<8x128xf32>
    %254 = arith.addf %252, %253 : vector<8x128xf32>
    %255 = arith.negf %254 : vector<8x128xf32>
    %256 = math.exp %255 : vector<8x128xf32>
    %cst_60 = arith.constant 1.000000e+00 : f32
    %257 = vector.broadcast %cst_60 : f32 to vector<8x128xf32>
    %258 = arith.addf %257, %256 : vector<8x128xf32>
    %259 = arith.divf %257, %258 : vector<8x128xf32>
    %260 = math.tanh %254 : vector<8x128xf32>
    %261 = vector.extract_strided_slice %259 {offsets = [0, 0], sizes = [8, 32], strides = [1, 1]} : vector<8x128xf32> to vector<8x32xf32>
    %262 = vector.extract_strided_slice %259 {offsets = [0, 32], sizes = [8, 32], strides = [1, 1]} : vector<8x128xf32> to vector<8x32xf32>
    %263 = vector.extract_strided_slice %260 {offsets = [0, 64], sizes = [8, 32], strides = [1, 1]} : vector<8x128xf32> to vector<8x32xf32>
    %264 = vector.extract_strided_slice %259 {offsets = [0, 96], sizes = [8, 32], strides = [1, 1]} : vector<8x128xf32> to vector<8x32xf32>
    %265 = arith.mulf %262, %230 : vector<8x32xf32>
    %266 = arith.mulf %261, %263 : vector<8x32xf32>
    %267 = arith.addf %265, %266 : vector<8x32xf32>
    %268 = math.tanh %267 : vector<8x32xf32>
    %269 = arith.mulf %264, %268 : vector<8x32xf32>
    %cst_61 = arith.constant dense<0.000000e+00> : vector<8x128xf32>
    %270 = tpu.matmul %269, %3, %cst_61 {dimension_numbers = #tpu.dot_dimension_numbers<[1], [0], [0], [1], [0, 0, 1, 1], [], []>} : vector<8x32xf32>, vector<32x128xf32>, vector<8x128xf32> -> vector<8x128xf32>
    %cst_62 = arith.constant dense<0.000000e+00> : vector<8x128xf32>
    %271 = tpu.matmul %251, %7, %cst_62 {dimension_numbers = #tpu.dot_dimension_numbers<[1], [0], [0], [1], [0, 0, 1, 1], [], []>} : vector<8x32xf32>, vector<32x128xf32>, vector<8x128xf32> -> vector<8x128xf32>
    %272 = arith.addf %270, %271 : vector<8x128xf32>
    %273 = arith.addf %272, %11 : vector<8x128xf32>
    %274 = arith.negf %273 : vector<8x128xf32>
    %275 = math.exp %274 : vector<8x128xf32>
    %cst_63 = arith.constant 1.000000e+00 : f32
    %276 = vector.broadcast %cst_63 : f32 to vector<8x128xf32>
    %277 = arith.addf %276, %275 : vector<8x128xf32>
    %278 = arith.divf %276, %277 : vector<8x128xf32>
    %279 = math.tanh %273 : vector<8x128xf32>
    %280 = vector.extract_strided_slice %278 {offsets = [0, 0], sizes = [8, 32], strides = [1, 1]} : vector<8x128xf32> to vector<8x32xf32>
    %281 = vector.extract_strided_slice %278 {offsets = [0, 32], sizes = [8, 32], strides = [1, 1]} : vector<8x128xf32> to vector<8x32xf32>
    %282 = vector.extract_strided_slice %279 {offsets = [0, 64], sizes = [8, 32], strides = [1, 1]} : vector<8x128xf32> to vector<8x32xf32>
    %283 = vector.extract_strided_slice %278 {offsets = [0, 96], sizes = [8, 32], strides = [1, 1]} : vector<8x128xf32> to vector<8x32xf32>
    %284 = arith.mulf %281, %249 : vector<8x32xf32>
    %285 = arith.mulf %280, %282 : vector<8x32xf32>
    %286 = arith.addf %284, %285 : vector<8x32xf32>
    %287 = math.tanh %286 : vector<8x32xf32>
    %288 = arith.mulf %283, %287 : vector<8x32xf32>
    %289 = vector.extract_strided_slice %25 {offsets = [56, 0], sizes = [8, 128], strides = [1, 1]} : vector<64x128xf32> to vector<8x128xf32>
    %cst_64 = arith.constant dense<0.000000e+00> : vector<8x128xf32>
    %290 = tpu.matmul %269, %5, %cst_64 {dimension_numbers = #tpu.dot_dimension_numbers<[1], [0], [0], [1], [0, 0, 1, 1], [], []>} : vector<8x32xf32>, vector<32x128xf32>, vector<8x128xf32> -> vector<8x128xf32>
    %291 = arith.addf %289, %290 : vector<8x128xf32>
    %292 = arith.negf %291 : vector<8x128xf32>
    %293 = math.exp %292 : vector<8x128xf32>
    %cst_65 = arith.constant 1.000000e+00 : f32
    %294 = vector.broadcast %cst_65 : f32 to vector<8x128xf32>
    %295 = arith.addf %294, %293 : vector<8x128xf32>
    %296 = arith.divf %294, %295 : vector<8x128xf32>
    %297 = math.tanh %291 : vector<8x128xf32>
    %298 = vector.extract_strided_slice %296 {offsets = [0, 0], sizes = [8, 32], strides = [1, 1]} : vector<8x128xf32> to vector<8x32xf32>
    %299 = vector.extract_strided_slice %296 {offsets = [0, 32], sizes = [8, 32], strides = [1, 1]} : vector<8x128xf32> to vector<8x32xf32>
    %300 = vector.extract_strided_slice %297 {offsets = [0, 64], sizes = [8, 32], strides = [1, 1]} : vector<8x128xf32> to vector<8x32xf32>
    %301 = vector.extract_strided_slice %296 {offsets = [0, 96], sizes = [8, 32], strides = [1, 1]} : vector<8x128xf32> to vector<8x32xf32>
    %302 = arith.mulf %299, %267 : vector<8x32xf32>
    %303 = arith.mulf %298, %300 : vector<8x32xf32>
    %304 = arith.addf %302, %303 : vector<8x32xf32>
    %305 = math.tanh %304 : vector<8x32xf32>
    %306 = arith.mulf %301, %305 : vector<8x32xf32>
    %cst_66 = arith.constant dense<0.000000e+00> : vector<8x128xf32>
    %307 = tpu.matmul %306, %3, %cst_66 {dimension_numbers = #tpu.dot_dimension_numbers<[1], [0], [0], [1], [0, 0, 1, 1], [], []>} : vector<8x32xf32>, vector<32x128xf32>, vector<8x128xf32> -> vector<8x128xf32>
    %cst_67 = arith.constant dense<0.000000e+00> : vector<8x128xf32>
    %308 = tpu.matmul %288, %7, %cst_67 {dimension_numbers = #tpu.dot_dimension_numbers<[1], [0], [0], [1], [0, 0, 1, 1], [], []>} : vector<8x32xf32>, vector<32x128xf32>, vector<8x128xf32> -> vector<8x128xf32>
    %309 = arith.addf %307, %308 : vector<8x128xf32>
    %310 = arith.addf %309, %11 : vector<8x128xf32>
    %311 = arith.negf %310 : vector<8x128xf32>
    %312 = math.exp %311 : vector<8x128xf32>
    %cst_68 = arith.constant 1.000000e+00 : f32
    %313 = vector.broadcast %cst_68 : f32 to vector<8x128xf32>
    %314 = arith.addf %313, %312 : vector<8x128xf32>
    %315 = arith.divf %313, %314 : vector<8x128xf32>
    %316 = math.tanh %310 : vector<8x128xf32>
    %317 = vector.extract_strided_slice %315 {offsets = [0, 0], sizes = [8, 32], strides = [1, 1]} : vector<8x128xf32> to vector<8x32xf32>
    %318 = vector.extract_strided_slice %315 {offsets = [0, 32], sizes = [8, 32], strides = [1, 1]} : vector<8x128xf32> to vector<8x32xf32>
    %319 = vector.extract_strided_slice %316 {offsets = [0, 64], sizes = [8, 32], strides = [1, 1]} : vector<8x128xf32> to vector<8x32xf32>
    %320 = vector.extract_strided_slice %315 {offsets = [0, 96], sizes = [8, 32], strides = [1, 1]} : vector<8x128xf32> to vector<8x32xf32>
    %321 = arith.mulf %318, %286 : vector<8x32xf32>
    %322 = arith.mulf %317, %319 : vector<8x32xf32>
    %323 = arith.addf %321, %322 : vector<8x32xf32>
    %324 = math.tanh %323 : vector<8x32xf32>
    %325 = arith.mulf %320, %324 : vector<8x32xf32>
    %c0_69 = arith.constant 0 : index
    %c0_70 = arith.constant 0 : index
    %326 = vector.load %arg7[%c0_69, %c0_70] : memref<32x64xf32, #tpu.memory_space<vmem>>, vector<32x64xf32>
    %cst_71 = arith.constant dense<0.000000e+00> : vector<8x64xf32>
    %327 = tpu.matmul %325, %326, %cst_71 {dimension_numbers = #tpu.dot_dimension_numbers<[1], [0], [0], [1], [0, 0, 1, 1], [], []>} : vector<8x32xf32>, vector<32x64xf32>, vector<8x64xf32> -> vector<8x64xf32>
    %c0_72 = arith.constant 0 : index
    %c0_73 = arith.constant 0 : index
    %328 = vector.load %arg8[%c0_72, %c0_73] : memref<1x64xf32, #tpu.memory_space<vmem>>, vector<1x64xf32>
    %329 = vector.broadcast %328 : vector<1x64xf32> to vector<8x64xf32>
    %330 = arith.addf %327, %329 : vector<8x64xf32>
    %cst_74 = arith.constant 0.000000e+00 : f32
    %331 = vector.broadcast %cst_74 : f32 to vector<8x64xf32>
    %332 = arith.maximumf %330, %331 : vector<8x64xf32>
    %c0_75 = arith.constant 0 : index
    %c0_76 = arith.constant 0 : index
    %333 = vector.load %arg9[%c0_75, %c0_76] : memref<64x4xf32, #tpu.memory_space<vmem>>, vector<64x4xf32>
    %cst_77 = arith.constant dense<0.000000e+00> : vector<8x4xf32>
    %334 = tpu.matmul %332, %333, %cst_77 {dimension_numbers = #tpu.dot_dimension_numbers<[1], [0], [0], [1], [0, 0, 1, 1], [], []>} : vector<8x64xf32>, vector<64x4xf32>, vector<8x4xf32> -> vector<8x4xf32>
    %c0_78 = arith.constant 0 : index
    %c0_79 = arith.constant 0 : index
    %335 = vector.load %arg10[%c0_78, %c0_79] : memref<1x4xf32, #tpu.memory_space<vmem>>, vector<1x4xf32>
    %336 = vector.broadcast %335 : vector<1x4xf32> to vector<8x4xf32>
    %337 = arith.addf %334, %336 : vector<8x4xf32>
    %c0_80 = arith.constant 0 : index
    %c0_81 = arith.constant 0 : index
    %338 = vector.load %arg11[%c0_80, %c0_81] : memref<8x4xf32, #tpu.memory_space<vmem>>, vector<8x4xf32>
    tpu.vector_store %arg11[%c0_80, %c0_81], %337 {strides = array<i32>} : memref<8x4xf32, #tpu.memory_space<vmem>>, vector<8x4xf32>,
    return
  }
  func.func @transform_0(%arg0: i32) -> (i32, i32, i32) {
    %c0_i32 = arith.constant 0 : i32
    %c0_i32_0 = arith.constant 0 : i32
    %c0_i32_1 = arith.constant 0 : i32
    return %arg0, %c0_i32, %c0_i32_0 : i32, i32, i32
  }
  func.func @transform_1(%arg0: i32) -> (i32, i32) {
    %c0_i32 = arith.constant 0 : i32
    %c0_i32_0 = arith.constant 0 : i32
    %c0_i32_1 = arith.constant 0 : i32
    return %c0_i32, %c0_i32_0 : i32, i32
  }
  func.func @transform_2(%arg0: i32) -> (i32, i32) {
    %c0_i32 = arith.constant 0 : i32
    %c0_i32_0 = arith.constant 0 : i32
    %c0_i32_1 = arith.constant 0 : i32
    return %c0_i32, %c0_i32_0 : i32, i32
  }
  func.func @transform_3(%arg0: i32) -> (i32, i32, i32) {
    %c0_i32 = arith.constant 0 : i32
    %c0_i32_0 = arith.constant 0 : i32
    %c0_i32_1 = arith.constant 0 : i32
    %c0_i32_2 = arith.constant 0 : i32
    return %c0_i32, %c0_i32_0, %c0_i32_1 : i32, i32, i32
  }
  func.func @transform_4(%arg0: i32) -> (i32, i32, i32) {
    %c0_i32 = arith.constant 0 : i32
    %c0_i32_0 = arith.constant 0 : i32
    %c0_i32_1 = arith.constant 0 : i32
    %c0_i32_2 = arith.constant 0 : i32
    return %c0_i32, %c0_i32_0, %c0_i32_1 : i32, i32, i32
  }
  func.func @transform_5(%arg0: i32) -> (i32, i32, i32) {
    %c0_i32 = arith.constant 0 : i32
    %c0_i32_0 = arith.constant 0 : i32
    %c0_i32_1 = arith.constant 0 : i32
    %c0_i32_2 = arith.constant 0 : i32
    return %c0_i32, %c0_i32_0, %c0_i32_1 : i32, i32, i32
  }
  func.func @transform_6(%arg0: i32) -> (i32, i32) {
    %c0_i32 = arith.constant 0 : i32
    %c0_i32_0 = arith.constant 0 : i32
    %c0_i32_1 = arith.constant 0 : i32
    return %c0_i32, %c0_i32_0 : i32, i32
  }
  func.func @transform_7(%arg0: i32) -> (i32, i32) {
    %c0_i32 = arith.constant 0 : i32
    %c0_i32_0 = arith.constant 0 : i32
    %c0_i32_1 = arith.constant 0 : i32
    return %c0_i32, %c0_i32_0 : i32, i32
  }
  func.func @transform_8(%arg0: i32) -> (i32, i32) {
    %c0_i32 = arith.constant 0 : i32
    %c0_i32_0 = arith.constant 0 : i32
    %c0_i32_1 = arith.constant 0 : i32
    return %c0_i32, %c0_i32_0 : i32, i32
  }
  func.func @transform_9(%arg0: i32) -> (i32, i32) {
    %c0_i32 = arith.constant 0 : i32
    %c0_i32_0 = arith.constant 0 : i32
    %c0_i32_1 = arith.constant 0 : i32
    return %c0_i32, %c0_i32_0 : i32, i32
  }
  func.func @transform_10(%arg0: i32) -> (i32, i32) {
    %c0_i32 = arith.constant 0 : i32
    %c0_i32_0 = arith.constant 0 : i32
    return %arg0, %c0_i32 : i32, i32
  }
}

</mosaic_0001>

<bundles_post_ra>
// kernel: tpu_custom_call.1
= control target key start
LH: loop header
LB: loop body
LE: loop exit
PB: predicated region body
PF: predicated region fallthrough
CT: control target
= control target key end

     0   :  { %15 = vsyncpa [#allocation3], 0  ;;  %s4215_s0 = inlined_call_operand.vmem [shape: f32[1,64,16], index: 0, kind: input, shape index: {}]   ;;  %s4216_s1 = inlined_call_operand.hbm [shape: f32[16,32], index: 1, kind: input, shape index: {}]   ;;  %s4217_s2 = inlined_call_operand.hbm [shape: f32[1,32], index: 2, kind: input, shape index: {}]   ;;  %s4218_s3 = inlined_call_operand.vmem [shape: f32[2,32,128], index: 3, kind: input, shape index: {}]   ;;  %s4219_s4 = inlined_call_operand.vmem [shape: f32[2,32,128], index: 4, kind: input, shape index: {}]   ;;  %s4220_s5 = inlined_call_operand.vmem [shape: f32[2,1,128], index: 5, kind: input, shape index: {}]   ;;  %s4221_s6 = inlined_call_operand.vmem [shape: f32[32,64], index: 6, kind: input, shape index: {}]   ;;  %s4222_s7 = inlined_call_operand.vmem [shape: f32[1,64], index: 7, kind: input, shape index: {}]   ;;  %s4223_s8 = inlined_call_operand.vmem [shape: f32[64,4], index: 8, kind: input, shape index: {}]   ;;  %s4224_s9 = inlined_call_operand.vmem [shape: f32[1,4], index: 9, kind: input, shape index: {}]   ;;  %s4225_s10 = inlined_call_operand.vmem [shape: f32[8,4], index: 10, kind: output, shape index: {}]  }
   0x1   :  { %16 = vsyncpa [#allocation5], 0  ;;  %s3640_s13 = smov [#allocation2]   ;;  %s3592_s17 = scalar_lea.hbm %s4216_s1, 256 }
   0x2   :  { %s24_s14 = sshll.u32 %s3640_s13, 4  ;;  %p3593_p0 = scmp.ne.s32.totalorder %s4216_s1, %s3592_s17  ;;  %s25_s14 = int_to_ptr.vmem [resolvable:$true] %s24_s14 }
   0x3   :  { %p3596_p1 = scmp.lt.u32.totalorder %s3592_s17, %s4216_s1 }
   0x5   :  { %p3598_p2 = pnand %p3596_p1, %p3593_p0 }
   0x7   :  { %3601 = shalt.err (!%p3598_p2)
}
   0x8   :  { %s3602_s22 = scalar_lea.vmem %s25_s14, 256  ;;  %p3607_p4 = scmp.lt.s32.totalorder %s25_s14, %s25_s14 }
   0x9   :  { %p3603_p3 = scmp.ne.s32.totalorder %s25_s14, %s3602_s22  ;;  %p3608_p5 = scmp.lt.s32.totalorder %s3602_s22, %s3602_s22 }
   0xb   :  { %p3609_p6 = por %p3608_p5, %p3607_p4 }
   0xd   :  { %p3610_p7 = pnand %p3609_p6, %p3603_p3 }
   0xf   :  { %3613 = shalt.err (!%p3610_p7)
}
  0x10   :  { %s3641_s23 = smov 128   ;;  %s3642_s24 = smov 8  }
  0x11   :  { %30 = dma.hbm_to_vmem [thread:$0]  %s4216_s1, 256, %s25_s14, [#allocation3], %s3641_s23, %s3641_s23, %s3642_s24  }
  0x12   :  { %s3643_s27 = smov [#allocation4]   ;;  %s3614_s11 = scalar_lea.hbm %s4217_s2, 16 }
  0x13   :  { %s37_s28 = sshll.u32 %s3643_s27, 4  ;;  %p3615_p8 = scmp.ne.s32.totalorder %s4217_s2, %s3614_s11  ;;  %s38_s28 = int_to_ptr.vmem [resolvable:$true] %s37_s28 }
  0x14   :  { %p3618_p9 = scmp.lt.u32.totalorder %s3614_s11, %s4217_s2 }
  0x16   :  { %p3620_p10 = pnand %p3618_p9, %p3615_p8 }
  0x18   :  { %3623 = shalt.err (!%p3620_p10)
}
  0x19   :  { %s3624_s17 = scalar_lea.vmem %s38_s28, 16  ;;  %s3628_s1 = scalar_lea.vmem %s38_s28, 32 }
  0x1a   :  { %p3625_p11 = scmp.ne.s32.totalorder %s38_s28, %s3624_s17  ;;  %p3629_p12 = scmp.lt.s32.totalorder %s38_s28, %s38_s28 }
  0x1b   :  { %p3630_p13 = scmp.lt.s32.totalorder %s3628_s1, %s3624_s17 }
  0x1d   :  { %p3631_p0 = por %p3630_p13, %p3629_p12 }
  0x1f   :  { %p3632_p1 = pnand %p3631_p0, %p3625_p11 }
  0x21   :  { %3635 = shalt.err (!%p3632_p1)
}
  0x22   :  { %40 = dma.hbm_to_vmem [thread:$0]  %s4217_s2, 16, %s38_s28, [#allocation5]  }
  0x23   :  { %3636 = dma.done.wait [#allocation3], 256  }
  0x24   :  { %3637 = vsyncadd [#allocation3], 4294967040 }
  0x25   :  { %3638 = dma.done.wait [#allocation5], 16  }
  0x26   :  { %3639 = vsyncadd [#allocation5], 4294967280  ;;  %vm104_vm0 = vcmask 130048   ;;  %v95_v0 = vld [vmem:[#allocation2] sm:$0xff]  ;;  %v96_v1 = vld [vmem:[#allocation2 + $0x8] sm:$0xff]  ;;  %v3644_v17 = vmov 0.0|0.0  }
  0x27   :  { %v87_v2 = vld [vmem:[%s4215_s0] sm:$0xff]  ;;  %v3277_v3 = vpack.c.bf16 %v96_v1, %v95_v0  ;;  %v62_v5 = vld [vmem:[%s4218_s3 + $0x8] sm:$0xff]  ;;  %v63_v7 = vld [vmem:[%s4218_s3 + $0x10] sm:$0xff]  ;;  %vm249_vm1 = vcmask 261120   ;;  %vm3645_vm2 = vmmov 0   ;;  %v3646_v42 = vmov 0.0  }
  0x28   :  { %2951 = vmatprep.mubr.msk.f32.mxu0 %vm104_vm0, %v87_v2  ;;  %v61_v4 = vld [vmem:[%s4218_s3] sm:$0xff]  ;;  %v64_v8 = vld [vmem:[%s4218_s3 + $0x18] sm:$0xff]  ;;  %v88_v9 = vld [vmem:[%s4215_s0 + $0x8] sm:$0xff]  ;;  %s3647_s29 = smov 64   ;;  %s3648_s30 = smov 32   ;;  %vm2639_vm3 = vcmask 523264  }
  0x29   :  { %3278 = vmatprep.subr.bf16.mxu0 %v3277_v3  ;;  %v3281_v6 = vpack.c.bf16 %v62_v5, %v61_v4  ;;  %v89_v10 = vld [vmem:[%s4215_s0 + $0x10] sm:$0xff]  ;;  %v3285_v11 = vpack.c.bf16 %v64_v8, %v63_v7  ;;  %v90_v12 = vld [vmem:[%s4215_s0 + $0x18] sm:$0xff]  ;;  %v91_v13 = vld [vmem:[%s4215_s0 + $0x20] sm:$0xff]  ;;  %vm2713_vm4 = vcmask 31744  }
  0x2a   :  { %3280 = vmatpush3.bf16.msra.mxu0 %v3277_v3  ;;  %v92_v14 = vld [vmem:[%s4215_s0 + $0x28] sm:$0xff]  ;;  %v93_v15 = vld [vmem:[%s4215_s0 + $0x30] sm:$0xff]  ;;  %v94_v16 = vld [vmem:[%s4215_s0 + $0x38] sm:$0xff] }
  0x2b   :  { %3282 = vmatprep.subr.bf16.mxu0 %v3281_v6  ;;  %3451 = vmatprep.subr.bf16.mxu1 %v3281_v6  ;;  %v2731_v18 = vld [vmem:[#allocation4] ss:$0 sm:$0xff]  ;;  %v70_v22 = vld [vmem:[%s4219_s4] sm:$0xff]  ;;  %v71_v23 = vld [vmem:[%s4219_s4 + $0x8] sm:$0xff] }
  0x2c   :  { %3453 = vmatpush3.bf16.msra.mxu1 %v3281_v6  ;;  %v3780_v27 = vpack.c.bf16 %v71_v23, %v70_v22  ;;  %v72_v31 = vld [vmem:[%s4219_s4 + $0x10] sm:$0xff]  ;;  %v73_v32 = vld [vmem:[%s4219_s4 + $0x18] sm:$0xff]  ;;  %v3814_v52 = vld [vmem:[%s4220_s5] ss:$0 sm:$0xff] }
  0x2d   :  { %2952 = vmatmul.mubr.msk.f32.vlgmr.msra.gmra.mrb[0].mxu0 %vm104_vm0, %v88_v9  ;;  %3452 = vmatprep.subr.bf16.mxu1 %v3285_v11  ;;  %v3791_v35 = vpack.c.bf16 %v73_v32, %v72_v31  ;;  %v2725_v9 = vld [vmem:[%s4219_s4 + $0x20] sm:$0xff] }
  0x2e   :  { %2954 = vmatprep.mubr.msk.f32.mxu0 %vm104_vm0, %v89_v10  ;;  %3284 = vmatpush3.bf16.msra.mxu0 %v3281_v6  ;;  %v2726_v10 = vld [vmem:[%s4219_s4 + $0x28] sm:$0xff] }
  0x2f   :  { %3286 = vmatprep.subr.bf16.mxu0 %v3285_v11 }
  0x30   :  { %3454 = vmatpush3.bf16.msra.mxu1 %v3285_v11 }
  0x31   :  { %2955 = vmatmul.mubr.msk.f32.gmra.mrb[2].mxu0 %vm104_vm0, %v90_v12  ;;  %3295 = vmatprep.subr.bf16.mxu1 %v3644_v17  ;;  %v3843_v12 = vpack.c.bf16 %v2726_v10, %v2725_v9 }
  0x32   :  { %2957 = vmatprep.mubr.msk.f32.mxu0 %vm104_vm0, %v91_v13  ;;  %3288 = vmatpush3.bf16.msra.mxu0 %v3285_v11  ;;  %v2727_v11 = vld [vmem:[%s4219_s4 + $0x30] sm:$0xff]  ;;  %v2728_v13 = vld [vmem:[%s4219_s4 + $0x38] sm:$0xff] }
  0x33   :  { %3289 = vmatprep.subr.bf16.mxu0 %v3644_v17 }
  0x35   :  { %2958 = vmatmul.mubr.msk.f32.gmra.mrb[4].mxu0 %vm104_vm0, %v92_v14  ;;  %v2721_v14 = vld [vmem:[%s4218_s3 + $0x20] sm:$0xff] }
  0x36   :  { %2960 = vmatprep.mubr.msk.f32.mxu0 %vm104_vm0, %v93_v15  ;;  %v2722_v15 = vld [vmem:[%s4218_s3 + $0x28] sm:$0xff] }
  0x39   :  { %2961 = vmatmul.mubr.msk.f32.gmra.mrb[6].mxu0 %vm104_vm0, %v94_v16  ;;  %v3854_v16 = vpack.c.bf16 %v2722_v15, %v2721_v14 }
 0x100   :  { %v2953_v19 = vpop.f32.mrb[0].mxu0 }
 0x101   :  { %v201_v20 = vadd.f32 %v2953_v19, %v2731_v18  ;;  %v195_v21 = vpop.f32.mrb[1].mxu0  ;;  %v2724_v19 = vld [vmem:[%s4218_s3 + $0x38] sm:$0xff] }
 0x102   :  { %v196_v24 = vadd.f32 %v2731_v18, %v195_v21 }
 0x103   :  { %v235_v28 = vmax.f32 %v201_v20, 0.0  ;;  %v3863_v20 = vpack.c.bf16 %v2728_v13, %v2727_v11 }
 0x104   :  { %v234_v25 = vmax.f32 %v196_v24, 0.0  ;;  %v2956_v26 = vpop.f32.mrb[2].mxu0 }
 0x105   :  { %v211_v29 = vadd.f32 %v2956_v26, %v2731_v18  ;;  %v205_v30 = vpop.f32.mrb[3].mxu0 }
 0x106   :  { %v206_v33 = vadd.f32 %v2731_v18, %v205_v30  ;;  %2971 = vmatprep.mubr.msk.f32.mxu0 %vm249_vm1, %v234_v25  ;;  %v3902_v30 = vld [vmem:[%s4220_s5 + $0x1] ss:$0 sm:$0xff] }
 0x107   :  { %2972 = vmatmul.mubr.msk.f32.vlgmr.msra.gmra.mrb[8].mxu0 %vm249_vm1, %v235_v28  ;;  %v237_v37 = vmax.f32 %v211_v29, 0.0 }
 0x108   :  { %v236_v34 = vmax.f32 %v206_v33, 0.0  ;;  %3291 = vmatpush3.bf16.msra.mxu0 %v3780_v27  ;;  %v2959_v36 = vpop.f32.mrb[4].mxu0 }
 0x109   :  { %3292 = vmatprep.subr.bf16.mxu0 %v3644_v17  ;;  %v221_v38 = vadd.f32 %v2959_v36, %v2731_v18  ;;  %v215_v39 = vpop.f32.mrb[5].mxu0 }
 0x10a   :  { %2974 = vmatprep.mubr.msk.f32.mxu0 %vm249_vm1, %v236_v34  ;;  %v216_v40 = vadd.f32 %v2731_v18, %v215_v39 }
 0x10b   :  { %2975 = vmatmul.mubr.msk.f32.gmra.mrb[10].mxu0 %vm249_vm1, %v237_v37  ;;  %v239_v41 = vmax.f32 %v221_v38, 0.0 }
 0x10c   :  { %3294 = vmatpush3.bf16.msra.mxu0 %v3791_v35  ;;  %2991 = vmatprep.mubr.msk.f32.mxu0 %vm3645_vm2, %v3646_v42  ;;  %v238_v43 = vmax.f32 %v216_v40, 0.0  ;;  %v2962_v44 = vpop.f32.mrb[6].mxu0 }
 0x10d   :  { %3301 = vmatprep.subr.bf16.mxu0 %v3644_v17  ;;  %v231_v45 = vadd.f32 %v2962_v44, %v2731_v18  ;;  %v225_v46 = vpop.f32.mrb[7].mxu0 }
 0x10e   :  { %2977 = vmatprep.mubr.msk.f32.mxu1 %vm249_vm1, %v238_v43  ;;  %v226_v47 = vadd.f32 %v2731_v18, %v225_v46  ;;  %v2723_v18 = vld [vmem:[%s4218_s3 + $0x30] sm:$0xff] }
 0x10f   :  { %2992 = vmatmul.mubr.f32.vlgmr.msra.gmra.mrb[12].mxu0 %v3646_v42  ;;  %2978 = vmatmul.mubr.msk.f32.vlgmr.msra.gmra.mrb[0].mxu1 %vm249_vm1, %v239_v41  ;;  %v241_v48 = vmax.f32 %v231_v45, 0.0  ;;  %v3867_v21 = vpack.c.bf16 %v2724_v19, %v2723_v18 }
 0x110   :  { %3013 = vmatprep.mubr.msk.f32.mxu0 %vm3645_vm2, %v3646_v42  ;;  %v240_v49 = vmax.f32 %v226_v47, 0.0  ;;  %3297 = vmatpush3.bf16.msra.mxu1 %v3843_v12 }
 0x111   :  { %3298 = vmatprep.subr.bf16.mxu1 %v3644_v17  ;;  %3303 = vmatpush3.bf16.msra.mxu0 %v3854_v16 }
 0x112   :  { %2980 = vmatprep.mubr.msk.f32.mxu1 %vm249_vm1, %v240_v49  ;;  %3304 = vmatprep.subr.bf16.mxu0 %v3644_v17 }
 0x113   :  { %2981 = vmatmul.mubr.msk.f32.gmra.mrb[2].mxu1 %vm249_vm1, %v241_v48 }
 0x114   :  { %3002 = vmatprep.mubr.msk.f32.mxu1 %vm3645_vm2, %v3646_v42  ;;  %3300 = vmatpush3.bf16.msra.mxu1 %v3863_v20 }
 0x115   :  { %3307 = vmatprep.subr.bf16.mxu1 %v3644_v17  ;;  %3306 = vmatpush3.bf16.msra.mxu0 %v3867_v21 }
 0x116   :  { %3313 = vmatprep.subr.bf16.mxu0 %v3644_v17 }
 0x117   :  { %3003 = vmatmul.mubr.f32.vlgmr.msra.gmra.mrb[4].mxu1 %v3646_v42 }
 0x118   :  { %3309 = vmatpush3.bf16.msra.mxu1 %v3780_v27  ;;  %3024 = vmatprep.mubr.msk.f32.mxu1 %vm3645_vm2, %v3646_v42 }
 0x119   :  { %3310 = vmatprep.subr.bf16.mxu1 %v3644_v17 }
 0x11c   :  { %3312 = vmatpush3.bf16.msra.mxu1 %v3791_v35 }
 0x11d   :  { %3319 = vmatprep.subr.bf16.mxu1 %v3644_v17 }
 0x1da   :  { %v3809_v50 = vpop.f32.mrb[8].mxu0 }
 0x1db   :  { %v340_v51 = vpop.f32.mrb[9].mxu0  ;;  %v346_v29 = vadd.f32 %v3809_v50, %v3814_v52 }
 0x1dc   :  { %v341_v55 = vadd.f32 %v3814_v52, %v340_v51 }
 0x1de   :  { %v3816_v53 = vpop.f32.mrb[10].mxu0 }
 0x1df   :  { %v3818_v54 = vpop.f32.mrb[11].mxu0 }
 0x1e2   :  { %v448_v56 = vpop.f32.mrb[12].mxu0  ;;  %v3821_v59 = vpop.f32.mrb[0].mxu1 }
 0x1e3   :  { %v452_v57 = vadd.f32 %v448_v56, %v341_v55  ;;  %v2993_v58 = vpop.f32.mrb[13].mxu0  ;;  %v3823_v60 = vpop.f32.mrb[1].mxu1 }
 0x1e5   :  { %3464 = vtanh.f32 %v452_v57  ;;  %v2749_v0 = vmul.f32 -1.442695, %v452_v57 }
 0x1e6   :  { %v3826_v62 = vpop.f32.mrb[2].mxu1 }
 0x1e7   :  { %v3828_v63 = vpop.f32.mrb[3].mxu1  ;;  %3466 = vpow2.f32 %v2749_v0 }
 0x1ea   :  { %v543_v25 = vpop.f32.mrb[4].mxu1 }
 0x1eb   :  { %v3004_v26 = vpop.f32.mrb[5].mxu1 }
 0x1ef   :  { %v3465_v61 = vpop.eup %3464 }
 0x1f0   :  { %462 = vrot.lane.b32.xlu0 %v3465_v61, %s3647_s29 }
 0x1f1   :  { %v3467_v1 = vpop.eup %3466 }
 0x1f2   :  { %v456_v2 = vadd.f32 1.0, %v3467_v1 }
 0x1f4   :  { %3468 = vrcp.f32 %v456_v2 }
 0x1fe   :  { %v3469_v3 = vpop.eup %3468 }
 0x1ff   :  { %v460_v6 = vmul.f32 0.0, %v3469_v3 }
 0x262   :  { %v463_v4 = vpop.permute.xlu0 %462 }
 0x263   :  { %v465_v5 = vmul.f32 %v3469_v3, %v463_v4 }
 0x265   :  { %467 = vrot.lane.b32.xlu0 %v465_v5, %s3648_s30 }
 0x2d7   :  { %v468_v7 = vpop.permute.xlu0 %467 }
 0x2d8   :  { %v3831_v8 = vadd.f32 %v468_v7, %v460_v6 }
 0x2da   :  { %3470 = vtanh.f32 %v3831_v8 }
 0x2e4   :  { %v3471_v22 = vpop.eup %3470 }
 0x2e5   :  { %473 = vrot.lane.b32.xlu1 %v3471_v22, %s3647_s29  ;;  %v351_v22 = vadd.f32 %v3814_v52, %v3818_v54 }
 0x357   :  { %v474_v23 = vpop.permute.xlu1 %473 }
 0x358   :  { %v476_v24 = vmul.f32 %v3469_v3, %v474_v23 }
 0x35a   :  { %548 = vrot.lane.b32.xlu1 %v476_v24, %s3648_s30 }
 0x3cc   :  { %v549_v28 = vpop.permute.xlu1 %548 }
 0x3cd   :  { %3014 = vmatmul.mubr.msk.f32.vlgmr.msra.gmra.mrb[14].mxu0 %vm249_vm1, %v549_v28  ;;  %3025 = vmatmul.mubr.msk.f32.vlgmr.msra.gmra.mrb[6].mxu1 %vm249_vm1, %v549_v28 }
 0x3ce   :  { %3321 = vmatpush3.bf16.msra.mxu1 %v3854_v16  ;;  %3315 = vmatpush3.bf16.msra.mxu0 %v3843_v12 }
 0x3cf   :  { %3322 = vmatprep.subr.bf16.mxu1 %v3644_v17  ;;  %3316 = vmatprep.subr.bf16.mxu0 %v3644_v17 }
 0x3d0   :  { %3046 = vmatprep.mubr.msk.f32.mxu1 %vm3645_vm2, %v3646_v42  ;;  %3035 = vmatprep.mubr.msk.f32.mxu0 %vm3645_vm2, %v3646_v42 }
 0x3d2   :  { %3324 = vmatpush3.bf16.msra.mxu1 %v3867_v21  ;;  %3318 = vmatpush3.bf16.msra.mxu0 %v3863_v20 }
 0x3d3   :  { %3325 = vmatprep.subr.bf16.mxu0 %v3644_v17  ;;  %3331 = vmatprep.subr.bf16.mxu1 %v3644_v17 }
 0x4a0   :  { %v618_v31 = vpop.f32.mrb[14].mxu0  ;;  %v713_v32 = vpop.f32.mrb[6].mxu1 }
 0x4a1   :  { %v619_v33 = vadd.f32 %v618_v31, %v543_v25  ;;  %v717_v34 = vadd.f32 %v713_v32, %v346_v29  ;;  %v3015_v36 = vpop.f32.mrb[15].mxu0  ;;  %v3026_v37 = vpop.f32.mrb[7].mxu1 }
 0x4a3   :  { %v622_v38 = vadd.f32 %v3902_v30, %v619_v33  ;;  %3472 = vtanh.f32 %v717_v34  ;;  %v2753_v41 = vmul.f32 -1.442695, %v717_v34 }
 0x4a5   :  { %3474 = vtanh.f32 %v622_v38  ;;  %v2751_v43 = vmul.f32 -1.442695, %v622_v38 }
 0x4a6   :  { %3476 = vpow2.f32 %v2753_v41 }
 0x4a7   :  { %3478 = vpow2.f32 %v2751_v43 }
 0x4ad   :  { %v3473_v39 = vpop.eup %3472 }
 0x4ae   :  { %727 = vrot.lane.b32.xlu1 %v3473_v39, %s3647_s29 }
 0x4af   :  { %v3475_v40 = vpop.eup %3474 }
 0x4b0   :  { %632 = vrot.lane.b32.xlu0 %v3475_v40, %s3647_s29  ;;  %v3477_v44 = vpop.eup %3476 }
 0x4b1   :  { %v3479_v45 = vpop.eup %3478  ;;  %v721_v46 = vadd.f32 1.0, %v3477_v44 }
 0x4b2   :  { %v626_v47 = vadd.f32 1.0, %v3479_v45 }
 0x4b3   :  { %3480 = vrcp.f32 %v721_v46 }
 0x4b4   :  { %3482 = vrcp.f32 %v626_v47 }
 0x4bd   :  { %v3481_v48 = vpop.eup %3480 }
 0x4be   :  { %v3483_v51 = vpop.eup %3482  ;;  %v725_v57 = vmul.f32 %v3481_v48, %v3831_v8 }
 0x4bf   :  { %v630_v0 = vmul.f32 0.0, %v3483_v51 }
 0x520   :  { %v728_v49 = vpop.permute.xlu1 %727 }
 0x521   :  { %v730_v50 = vmul.f32 %v3481_v48, %v728_v49 }
 0x522   :  { %v633_v55 = vpop.permute.xlu0 %632 }
 0x523   :  { %v635_v56 = vmul.f32 %v3483_v51, %v633_v55  ;;  %732 = vrot.lane.b32.xlu1 %v730_v50, %s3648_s30 }
 0x525   :  { %637 = vrot.lane.b32.xlu0 %v635_v56, %s3648_s30 }
 0x595   :  { %v733_v58 = vpop.permute.xlu1 %732 }
 0x596   :  { %v3910_v61 = vadd.f32 %v733_v58, %v725_v57 }
 0x597   :  { %v638_v1 = vpop.permute.xlu0 %637 }
 0x598   :  { %3484 = vtanh.f32 %v3910_v61  ;;  %v3913_v2 = vadd.f32 %v638_v1, %v630_v0 }
 0x59a   :  { %3486 = vtanh.f32 %v3913_v2 }
 0x5a2   :  { %v3485_v3 = vpop.eup %3484 }
 0x5a3   :  { %738 = vrot.lane.b32.xlu1 %v3485_v3, %s3647_s29  ;;  %v356_v3 = vadd.f32 %v3816_v53, %v3814_v52 }
 0x5a4   :  { %v3487_v4 = vpop.eup %3486 }
 0x5a5   :  { %643 = vrot.lane.b32.xlu0 %v3487_v4, %s3647_s29 }
 0x615   :  { %v739_v5 = vpop.permute.xlu1 %738 }
 0x616   :  { %v741_v6 = vmul.f32 %v3481_v48, %v739_v5 }
 0x617   :  { %v644_v7 = vpop.permute.xlu0 %643 }
 0x618   :  { %v646_v8 = vmul.f32 %v3483_v51, %v644_v7  ;;  %818 = vrot.lane.b32.xlu1 %v741_v6, %s3648_s30 }
 0x61a   :  { %743 = vrot.lane.b32.xlu0 %v646_v8, %s3648_s30 }
 0x68a   :  { %v819_v9 = vpop.permute.xlu1 %818 }
 0x68b   :  { %3047 = vmatmul.mubr.msk.f32.vlgmr.msra.gmra.mrb[8].mxu1 %vm249_vm1, %v819_v9 }
 0x68c   :  { %v744_v10 = vpop.permute.xlu0 %743  ;;  %3333 = vmatpush3.bf16.msra.mxu1 %v3843_v12  ;;  %3068 = vmatprep.mubr.msk.f32.mxu1 %vm3645_vm2, %v3646_v42 }
 0x68d   :  { %3036 = vmatmul.mubr.msk.f32.vlgmr.msra.gmra.mrb[16].mxu0 %vm249_vm1, %v744_v10  ;;  %3334 = vmatprep.subr.bf16.mxu1 %v3644_v17 }
 0x68e   :  { %3327 = vmatpush3.bf16.msra.mxu0 %v3780_v27  ;;  %3057 = vmatprep.mubr.msk.f32.mxu0 %vm3645_vm2, %v3646_v42 }
 0x68f   :  { %3328 = vmatprep.subr.bf16.mxu0 %v3644_v17 }
 0x690   :  { %3336 = vmatpush3.bf16.msra.mxu1 %v3863_v20 }
 0x691   :  { %3343 = vmatprep.subr.bf16.mxu1 %v3644_v17 }
 0x692   :  { %3330 = vmatpush3.bf16.msra.mxu0 %v3791_v35 }
 0x693   :  { %3337 = vmatprep.subr.bf16.mxu0 %v3644_v17 }
 0x695   :  { %3058 = vmatmul.mubr.msk.f32.vlgmr.msra.gmra.mrb[18].mxu0 %vm249_vm1, %v819_v9 }
 0x696   :  { %3339 = vmatpush3.bf16.msra.mxu0 %v3854_v16  ;;  %3079 = vmatprep.mubr.msk.f32.mxu0 %vm3645_vm2, %v3646_v42 }
 0x697   :  { %3340 = vmatprep.subr.bf16.mxu0 %v3644_v17 }
 0x69a   :  { %3342 = vmatpush3.bf16.msra.mxu0 %v3867_v21 }
 0x69b   :  { %3349 = vmatprep.subr.bf16.mxu0 %v3644_v17 }
 0x75e   :  { %v888_v11 = vpop.f32.mrb[8].mxu1 }
 0x75f   :  { %v3048_v13 = vpop.f32.mrb[9].mxu1 }
 0x760   :  { %v813_v14 = vpop.f32.mrb[16].mxu0 }
 0x761   :  { %v889_v15 = vadd.f32 %v888_v11, %v813_v14  ;;  %v3037_v18 = vpop.f32.mrb[17].mxu0 }
 0x763   :  { %v892_v19 = vadd.f32 %v3902_v30, %v889_v15 }
 0x765   :  { %3488 = vtanh.f32 %v892_v19  ;;  %v2756_v29 = vmul.f32 -1.442695, %v892_v19 }
 0x768   :  { %v983_v23 = vpop.f32.mrb[18].mxu0 }
 0x769   :  { %v987_v24 = vadd.f32 %v983_v23, %v351_v22  ;;  %v3059_v25 = vpop.f32.mrb[19].mxu0 }
 0x76b   :  { %3490 = vtanh.f32 %v987_v24  ;;  %v2758_v31 = vmul.f32 -1.442695, %v987_v24 }
 0x76c   :  { %3492 = vpow2.f32 %v2756_v29 }
 0x76d   :  { %3494 = vpow2.f32 %v2758_v31 }
 0x76f   :  { %v3489_v26 = vpop.eup %3488 }
 0x770   :  { %902 = vrot.lane.b32.xlu0 %v3489_v26, %s3647_s29 }
 0x775   :  { %v3491_v28 = vpop.eup %3490 }
 0x776   :  { %997 = vrot.lane.b32.xlu1 %v3491_v28, %s3647_s29  ;;  %v3493_v32 = vpop.eup %3492 }
 0x777   :  { %v896_v33 = vadd.f32 1.0, %v3493_v32  ;;  %v3495_v34 = vpop.eup %3494 }
 0x778   :  { %v991_v36 = vadd.f32 1.0, %v3495_v34 }
 0x779   :  { %3496 = vrcp.f32 %v896_v33 }
 0x77a   :  { %3498 = vrcp.f32 %v991_v36 }
 0x783   :  { %v3497_v54 = vpop.eup %3496 }
 0x784   :  { %v3499_v39 = vpop.eup %3498  ;;  %v900_v43 = vmul.f32 %v3497_v54, %v3913_v2 }
 0x785   :  { %v995_v46 = vmul.f32 %v3499_v39, %v3910_v61 }
 0x7e2   :  { %v903_v37 = vpop.permute.xlu0 %902 }
 0x7e3   :  { %v905_v38 = vmul.f32 %v3497_v54, %v903_v37 }
 0x7e5   :  { %907 = vrot.lane.b32.xlu0 %v905_v38, %s3648_s30 }
 0x7e8   :  { %v998_v40 = vpop.permute.xlu1 %997 }
 0x7e9   :  { %v1000_v41 = vmul.f32 %v3499_v39, %v998_v40 }
 0x7eb   :  { %1002 = vrot.lane.b32.xlu1 %v1000_v41, %s3648_s30 }
 0x857   :  { %v908_v44 = vpop.permute.xlu0 %907 }
 0x858   :  { %v3949_v45 = vadd.f32 %v908_v44, %v900_v43 }
 0x85a   :  { %3500 = vtanh.f32 %v3949_v45 }
 0x85d   :  { %v1003_v47 = vpop.permute.xlu1 %1002 }
 0x85e   :  { %v3953_v48 = vadd.f32 %v1003_v47, %v995_v46 }
 0x860   :  { %3502 = vtanh.f32 %v3953_v48 }
 0x864   :  { %v3501_v49 = vpop.eup %3500 }
 0x865   :  { %913 = vrot.lane.b32.xlu0 %v3501_v49, %s3647_s29 }
 0x86a   :  { %v3503_v50 = vpop.eup %3502 }
 0x86b   :  { %1008 = vrot.lane.b32.xlu1 %v3503_v50, %s3647_s29 }
 0x8d7   :  { %v914_v51 = vpop.permute.xlu0 %913 }
 0x8d8   :  { %v916_v55 = vmul.f32 %v3497_v54, %v914_v51  ;;  %v361_v51 = vadd.f32 %v3814_v52, %v3823_v60 }
 0x8da   :  { %1013 = vrot.lane.b32.xlu0 %v916_v55, %s3648_s30 }
 0x8dd   :  { %v1009_v56 = vpop.permute.xlu1 %1008 }
 0x8de   :  { %v1011_v57 = vmul.f32 %v3499_v39, %v1009_v56 }
 0x8e0   :  { %1088 = vrot.lane.b32.xlu1 %v1011_v57, %s3648_s30 }
 0x94c   :  { %v1014_v58 = vpop.permute.xlu0 %1013 }
 0x94d   :  { %3069 = vmatmul.mubr.msk.f32.vlgmr.msra.gmra.mrb[10].mxu1 %vm249_vm1, %v1014_v58 }
 0x94e   :  { %3345 = vmatpush3.bf16.msra.mxu1 %v3780_v27  ;;  %3090 = vmatprep.mubr.msk.f32.mxu1 %vm3645_vm2, %v3646_v42 }
 0x94f   :  { %3346 = vmatprep.subr.bf16.mxu1 %v3644_v17 }
 0x952   :  { %3348 = vmatpush3.bf16.msra.mxu1 %v3791_v35  ;;  %v1089_v61 = vpop.permute.xlu1 %1088 }
 0x953   :  { %3080 = vmatmul.mubr.msk.f32.vlgmr.msra.gmra.mrb[20].mxu0 %vm249_vm1, %v1089_v61  ;;  %3355 = vmatprep.subr.bf16.mxu1 %v3644_v17 }
 0x954   :  { %3351 = vmatpush3.bf16.msra.mxu0 %v3843_v12  ;;  %3101 = vmatprep.mubr.msk.f32.mxu0 %vm3645_vm2, %v3646_v42 }
 0x955   :  { %3091 = vmatmul.mubr.msk.f32.vlgmr.msra.gmra.mrb[12].mxu1 %vm249_vm1, %v1089_v61  ;;  %3352 = vmatprep.subr.bf16.mxu0 %v3644_v17 }
 0x956   :  { %3357 = vmatpush3.bf16.msra.mxu1 %v3854_v16  ;;  %3112 = vmatprep.mubr.msk.f32.mxu1 %vm3645_vm2, %v3646_v42 }
 0x957   :  { %3358 = vmatprep.subr.bf16.mxu1 %v3644_v17 }
 0x958   :  { %3354 = vmatpush3.bf16.msra.mxu0 %v3863_v20 }
 0x959   :  { %3361 = vmatprep.subr.bf16.mxu0 %v3644_v17 }
 0x95a   :  { %3360 = vmatpush3.bf16.msra.mxu1 %v3867_v21 }
 0x95b   :  { %3367 = vmatprep.subr.bf16.mxu1 %v3644_v17 }
 0xa20   :  { %v1083_v0 = vpop.f32.mrb[10].mxu1 }
 0xa21   :  { %v3070_v1 = vpop.f32.mrb[11].mxu1 }
 0xa26   :  { %v1158_v2 = vpop.f32.mrb[20].mxu0 }
 0xa27   :  { %v1159_v4 = vadd.f32 %v1158_v2, %v1083_v0  ;;  %v3081_v5 = vpop.f32.mrb[21].mxu0 }
 0xa28   :  { %v1253_v6 = vpop.f32.mrb[12].mxu1 }
 0xa29   :  { %v1162_v7 = vadd.f32 %v3902_v30, %v1159_v4  ;;  %v1257_v8 = vadd.f32 %v1253_v6, %v356_v3  ;;  %v3092_v9 = vpop.f32.mrb[13].mxu1 }
 0xa2b   :  { %3504 = vtanh.f32 %v1162_v7  ;;  %v2761_v13 = vmul.f32 -1.442695, %v1162_v7  ;;  %v2763_v14 = vmul.f32 -1.442695, %v1257_v8 }
 0xa2c   :  { %3506 = vtanh.f32 %v1257_v8 }
 0xa2d   :  { %3508 = vpow2.f32 %v2761_v13 }
 0xa2e   :  { %3510 = vpow2.f32 %v2763_v14 }
 0xa35   :  { %v3505_v10 = vpop.eup %3504 }
 0xa36   :  { %v3507_v11 = vpop.eup %3506  ;;  %1172 = vrot.lane.b32.xlu0 %v3505_v10, %s3647_s29 }
 0xa37   :  { %1267 = vrot.lane.b32.xlu1 %v3507_v11, %s3647_s29  ;;  %v3509_v53 = vpop.eup %3508 }
 0xa38   :  { %v3511_v15 = vpop.eup %3510  ;;  %v1166_v18 = vadd.f32 1.0, %v3509_v53 }
 0xa39   :  { %v1261_v19 = vadd.f32 1.0, %v3511_v15 }
 0xa3a   :  { %3512 = vrcp.f32 %v1166_v18 }
 0xa3b   :  { %3514 = vrcp.f32 %v1261_v19 }
 0xa44   :  { %v3513_v22 = vpop.eup %3512 }
 0xa45   :  { %v3515_v24 = vpop.eup %3514  ;;  %v1170_v29 = vmul.f32 %v3513_v22, %v3949_v45 }
 0xa46   :  { %v1265_v31 = vmul.f32 %v3515_v24, %v3953_v48 }
 0xaa8   :  { %v1173_v23 = vpop.permute.xlu0 %1172 }
 0xaa9   :  { %v1268_v25 = vpop.permute.xlu1 %1267  ;;  %v1175_v26 = vmul.f32 %v3513_v22, %v1173_v23 }
 0xaaa   :  { %v1270_v28 = vmul.f32 %v3515_v24, %v1268_v25 }
 0xaab   :  { %1177 = vrot.lane.b32.xlu0 %v1175_v26, %s3648_s30 }
 0xaac   :  { %1272 = vrot.lane.b32.xlu1 %v1270_v28, %s3648_s30 }
 0xb1d   :  { %v1178_v32 = vpop.permute.xlu0 %1177 }
 0xb1e   :  { %v1273_v33 = vpop.permute.xlu1 %1272  ;;  %v3990_v34 = vadd.f32 %v1178_v32, %v1170_v29 }
 0xb1f   :  { %v3992_v36 = vadd.f32 %v1273_v33, %v1265_v31 }
 0xb20   :  { %3516 = vtanh.f32 %v3990_v34 }
 0xb21   :  { %3518 = vtanh.f32 %v3992_v36 }
 0xb2a   :  { %v3517_v54 = vpop.eup %3516 }
 0xb2b   :  { %v3519_v37 = vpop.eup %3518  ;;  %1183 = vrot.lane.b32.xlu0 %v3517_v54, %s3647_s29  ;;  %v366_v54 = vadd.f32 %v3821_v59, %v3814_v52 }
 0xb2c   :  { %1278 = vrot.lane.b32.xlu1 %v3519_v37, %s3647_s29 }
 0xb9d   :  { %v1184_v38 = vpop.permute.xlu0 %1183 }
 0xb9e   :  { %v1279_v39 = vpop.permute.xlu1 %1278  ;;  %v1186_v40 = vmul.f32 %v3513_v22, %v1184_v38 }
 0xb9f   :  { %v1281_v41 = vmul.f32 %v3515_v24, %v1279_v39 }
 0xba0   :  { %1283 = vrot.lane.b32.xlu0 %v1186_v40, %s3648_s30 }
 0xba1   :  { %1358 = vrot.lane.b32.xlu1 %v1281_v41, %s3648_s30 }
 0xc12   :  { %v1284_v43 = vpop.permute.xlu0 %1283 }
 0xc13   :  { %v1359_v44 = vpop.permute.xlu1 %1358  ;;  %3102 = vmatmul.mubr.msk.f32.vlgmr.msra.gmra.mrb[22].mxu0 %vm249_vm1, %v1284_v43 }
 0xc14   :  { %3113 = vmatmul.mubr.msk.f32.vlgmr.msra.gmra.mrb[14].mxu1 %vm249_vm1, %v1359_v44  ;;  %3363 = vmatpush3.bf16.msra.mxu0 %v3780_v27 }
 0xc15   :  { %3364 = vmatprep.subr.bf16.mxu0 %v3644_v17  ;;  %3123 = vmatprep.mubr.msk.f32.mxu0 %vm3645_vm2, %v3646_v42 }
 0xc16   :  { %3369 = vmatpush3.bf16.msra.mxu1 %v3843_v12  ;;  %3134 = vmatprep.mubr.msk.f32.mxu1 %vm3645_vm2, %v3646_v42 }
 0xc17   :  { %3370 = vmatprep.subr.bf16.mxu1 %v3644_v17 }
 0xc18   :  { %3366 = vmatpush3.bf16.msra.mxu0 %v3791_v35 }
 0xc19   :  { %3373 = vmatprep.subr.bf16.mxu0 %v3644_v17 }
 0xc1a   :  { %3372 = vmatpush3.bf16.msra.mxu1 %v3863_v20 }
 0xc1b   :  { %3124 = vmatmul.mubr.msk.f32.vlgmr.msra.gmra.mrb[24].mxu0 %vm249_vm1, %v1359_v44  ;;  %3379 = vmatprep.subr.bf16.mxu1 %v3644_v17 }
 0xc1c   :  { %3375 = vmatpush3.bf16.msra.mxu0 %v3854_v16  ;;  %3145 = vmatprep.mubr.msk.f32.mxu0 %vm3645_vm2, %v3646_v42 }
 0xc1d   :  { %3376 = vmatprep.subr.bf16.mxu0 %v3644_v17 }
 0xc20   :  { %3378 = vmatpush3.bf16.msra.mxu0 %v3867_v21 }
 0xc21   :  { %3385 = vmatprep.subr.bf16.mxu0 %v3644_v17 }
 0xce6   :  { %v1353_v45 = vpop.f32.mrb[22].mxu0 }
 0xce7   :  { %v1428_v46 = vpop.f32.mrb[14].mxu1  ;;  %v3103_v47 = vpop.f32.mrb[23].mxu0 }
 0xce8   :  { %v1429_v48 = vadd.f32 %v1428_v46, %v1353_v45  ;;  %v3114_v49 = vpop.f32.mrb[15].mxu1 }
 0xcea   :  { %v1432_v50 = vadd.f32 %v3902_v30, %v1429_v48 }
 0xcec   :  { %3520 = vtanh.f32 %v1432_v50  ;;  %v2766_v0 = vmul.f32 -1.442695, %v1432_v50 }
 0xcee   :  { %v1523_v55 = vpop.f32.mrb[24].mxu0 }
 0xcef   :  { %v1527_v56 = vadd.f32 %v1523_v55, %v361_v51  ;;  %v3125_v57 = vpop.f32.mrb[25].mxu0 }
 0xcf1   :  { %3522 = vtanh.f32 %v1527_v56  ;;  %v2768_v1 = vmul.f32 -1.442695, %v1527_v56 }
 0xcf2   :  { %3524 = vpow2.f32 %v2766_v0 }
 0xcf3   :  { %3526 = vpow2.f32 %v2768_v1 }
 0xcf6   :  { %v3521_v58 = vpop.eup %3520 }
 0xcf7   :  { %1442 = vrot.lane.b32.xlu0 %v3521_v58, %s3647_s29 }
 0xcfb   :  { %v3523_v61 = vpop.eup %3522 }
 0xcfc   :  { %1537 = vrot.lane.b32.xlu1 %v3523_v61, %s3647_s29  ;;  %v3525_v2 = vpop.eup %3524 }
 0xcfd   :  { %v1436_v3 = vadd.f32 1.0, %v3525_v2  ;;  %v3527_v4 = vpop.eup %3526 }
 0xcfe   :  { %v1531_v5 = vadd.f32 1.0, %v3527_v4 }
 0xcff   :  { %3528 = vrcp.f32 %v1436_v3 }
 0xd00   :  { %3530 = vrcp.f32 %v1531_v5 }
 0xd09   :  { %v3529_v60 = vpop.eup %3528 }
 0xd0a   :  { %v3531_v8 = vpop.eup %3530  ;;  %v1440_v11 = vmul.f32 %v3529_v60, %v3990_v34 }
 0xd0b   :  { %v1535_v53 = vmul.f32 %v3531_v8, %v3992_v36 }
 0xd69   :  { %v1443_v6 = vpop.permute.xlu0 %1442 }
 0xd6a   :  { %v1445_v7 = vmul.f32 %v3529_v60, %v1443_v6 }
 0xd6c   :  { %1447 = vrot.lane.b32.xlu0 %v1445_v7, %s3648_s30 }
 0xd6e   :  { %v1538_v9 = vpop.permute.xlu1 %1537 }
 0xd6f   :  { %v1540_v10 = vmul.f32 %v3531_v8, %v1538_v9 }
 0xd71   :  { %1542 = vrot.lane.b32.xlu1 %v1540_v10, %s3648_s30 }
 0xdde   :  { %v1448_v13 = vpop.permute.xlu0 %1447 }
 0xddf   :  { %v4029_v14 = vadd.f32 %v1448_v13, %v1440_v11 }
 0xde1   :  { %3532 = vtanh.f32 %v4029_v14 }
 0xde3   :  { %v1543_v15 = vpop.permute.xlu1 %1542 }
 0xde4   :  { %v4033_v18 = vadd.f32 %v1543_v15, %v1535_v53 }
 0xde6   :  { %3534 = vtanh.f32 %v4033_v18 }
 0xdeb   :  { %v3533_v19 = vpop.eup %3532 }
 0xdec   :  { %1453 = vrot.lane.b32.xlu0 %v3533_v19, %s3647_s29  ;;  %v371_v19 = vadd.f32 %v3814_v52, %v3828_v63 }
 0xdf0   :  { %v3535_v22 = vpop.eup %3534 }
 0xdf1   :  { %1548 = vrot.lane.b32.xlu1 %v3535_v22, %s3647_s29 }
 0xe5e   :  { %v1454_v23 = vpop.permute.xlu0 %1453 }
 0xe5f   :  { %v1456_v24 = vmul.f32 %v3529_v60, %v1454_v23 }
 0xe61   :  { %1553 = vrot.lane.b32.xlu0 %v1456_v24, %s3648_s30 }
 0xe63   :  { %v1549_v25 = vpop.permute.xlu1 %1548 }
 0xe64   :  { %v1551_v26 = vmul.f32 %v3531_v8, %v1549_v25 }
 0xe66   :  { %1628 = vrot.lane.b32.xlu1 %v1551_v26, %s3648_s30 }
 0xed3   :  { %v1554_v28 = vpop.permute.xlu0 %1553 }
 0xed4   :  { %3135 = vmatmul.mubr.msk.f32.vlgmr.msra.gmra.mrb[16].mxu1 %vm249_vm1, %v1554_v28 }
 0xed5   :  { %3381 = vmatpush3.bf16.msra.mxu1 %v3780_v27  ;;  %3156 = vmatprep.mubr.msk.f32.mxu1 %vm3645_vm2, %v3646_v42 }
 0xed6   :  { %3382 = vmatprep.subr.bf16.mxu1 %v3644_v17 }
 0xed8   :  { %v1629_v29 = vpop.permute.xlu1 %1628 }
 0xed9   :  { %3384 = vmatpush3.bf16.msra.mxu1 %v3791_v35  ;;  %3146 = vmatmul.mubr.msk.f32.vlgmr.msra.gmra.mrb[26].mxu0 %vm249_vm1, %v1629_v29 }
 0xeda   :  { %3387 = vmatpush3.bf16.msra.mxu0 %v3843_v12  ;;  %3391 = vmatprep.subr.bf16.mxu1 %v3644_v17 }
 0xedb   :  { %3388 = vmatprep.subr.bf16.mxu0 %v3644_v17  ;;  %3167 = vmatprep.mubr.msk.f32.mxu0 %vm3645_vm2, %v3646_v42 }
 0xedc   :  { %3157 = vmatmul.mubr.msk.f32.vlgmr.msra.gmra.mrb[18].mxu1 %vm249_vm1, %v1629_v29 }
 0xedd   :  { %3393 = vmatpush3.bf16.msra.mxu1 %v3854_v16  ;;  %3178 = vmatprep.mubr.msk.f32.mxu1 %vm3645_vm2, %v3646_v42 }
 0xede   :  { %3390 = vmatpush3.bf16.msra.mxu0 %v3863_v20  ;;  %3394 = vmatprep.subr.bf16.mxu1 %v3644_v17 }
 0xedf   :  { %3397 = vmatprep.subr.bf16.mxu0 %v3644_v17 }
 0xee1   :  { %3396 = vmatpush3.bf16.msra.mxu1 %v3867_v21 }
 0xee2   :  { %3403 = vmatprep.subr.bf16.mxu1 %v3644_v17 }
 0xfa7   :  { %v1623_v31 = vpop.f32.mrb[16].mxu1 }
 0xfa8   :  { %v3136_v32 = vpop.f32.mrb[17].mxu1 }
 0xfac   :  { %v1698_v33 = vpop.f32.mrb[26].mxu0 }
 0xfad   :  { %v1699_v34 = vadd.f32 %v1698_v33, %v1623_v31  ;;  %v3147_v36 = vpop.f32.mrb[27].mxu0 }
 0xfaf   :  { %v1702_v37 = vadd.f32 %v3902_v30, %v1699_v34  ;;  %v1793_v38 = vpop.f32.mrb[18].mxu1 }
 0xfb0   :  { %v1797_v39 = vadd.f32 %v1793_v38, %v366_v54  ;;  %v3158_v40 = vpop.f32.mrb[19].mxu1 }
 0xfb1   :  { %3536 = vtanh.f32 %v1702_v37  ;;  %v2771_v44 = vmul.f32 -1.442695, %v1702_v37 }
 0xfb2   :  { %3538 = vtanh.f32 %v1797_v39  ;;  %v2773_v45 = vmul.f32 -1.442695, %v1797_v39 }
 0xfb3   :  { %3540 = vpow2.f32 %v2771_v44 }
 0xfb4   :  { %3542 = vpow2.f32 %v2773_v45 }
 0xfbb   :  { %v3537_v41 = vpop.eup %3536 }
 0xfbc   :  { %v3539_v43 = vpop.eup %3538  ;;  %1712 = vrot.lane.b32.xlu0 %v3537_v41, %s3647_s29 }
 0xfbd   :  { %1807 = vrot.lane.b32.xlu1 %v3539_v43, %s3647_s29  ;;  %v3541_v46 = vpop.eup %3540 }
 0xfbe   :  { %v3543_v47 = vpop.eup %3542  ;;  %v1706_v59 = vadd.f32 1.0, %v3541_v46 }
 0xfbf   :  { %v1801_v48 = vadd.f32 1.0, %v3543_v47 }
 0xfc0   :  { %3544 = vrcp.f32 %v1706_v59 }
 0xfc1   :  { %3546 = vrcp.f32 %v1801_v48 }
 0xfca   :  { %v3545_v49 = vpop.eup %3544 }
 0xfcb   :  { %v3547_v51 = vpop.eup %3546  ;;  %v1710_v58 = vmul.f32 %v3545_v49, %v4029_v14 }
 0xfcc   :  { %v1805_v61 = vmul.f32 %v3547_v51, %v4033_v18 }
0x102e   :  { %v1713_v50 = vpop.permute.xlu0 %1712 }
0x102f   :  { %v1808_v55 = vpop.permute.xlu1 %1807  ;;  %v1715_v56 = vmul.f32 %v3545_v49, %v1713_v50 }
0x1030   :  { %v1810_v57 = vmul.f32 %v3547_v51, %v1808_v55 }
0x1031   :  { %1717 = vrot.lane.b32.xlu0 %v1715_v56, %s3648_s30 }
0x1032   :  { %1812 = vrot.lane.b32.xlu1 %v1810_v57, %s3648_s30 }
0x10a3   :  { %v1718_v0 = vpop.permute.xlu0 %1717 }
0x10a4   :  { %v1813_v1 = vpop.permute.xlu1 %1812  ;;  %v4070_v2 = vadd.f32 %v1718_v0, %v1710_v58 }
0x10a5   :  { %v4072_v3 = vadd.f32 %v1813_v1, %v1805_v61 }
0x10a6   :  { %3548 = vtanh.f32 %v4070_v2 }
0x10a7   :  { %3550 = vtanh.f32 %v4072_v3 }
0x10b0   :  { %v3549_v4 = vpop.eup %3548 }
0x10b1   :  { %v3551_v5 = vpop.eup %3550  ;;  %1723 = vrot.lane.b32.xlu0 %v3549_v4, %s3647_s29 }
0x10b2   :  { %1818 = vrot.lane.b32.xlu1 %v3551_v5, %s3647_s29 }
0x1123   :  { %v1724_v60 = vpop.permute.xlu0 %1723 }
0x1124   :  { %v1819_v6 = vpop.permute.xlu1 %1818  ;;  %v1726_v7 = vmul.f32 %v3545_v49, %v1724_v60 }
0x1125   :  { %v1821_v8 = vmul.f32 %v3547_v51, %v1819_v6 }
0x1126   :  { %1823 = vrot.lane.b32.xlu0 %v1726_v7, %s3648_s30 }
0x1127   :  { %1898 = vrot.lane.b32.xlu1 %v1821_v8, %s3648_s30 }
0x1198   :  { %v1824_v9 = vpop.permute.xlu0 %1823 }
0x1199   :  { %v1899_v10 = vpop.permute.xlu1 %1898  ;;  %3168 = vmatmul.mubr.msk.f32.vlgmr.msra.gmra.mrb[28].mxu0 %vm249_vm1, %v1824_v9 }
0x119a   :  { %3179 = vmatmul.mubr.msk.f32.vlgmr.msra.gmra.mrb[20].mxu1 %vm249_vm1, %v1899_v10  ;;  %3399 = vmatpush3.bf16.msra.mxu0 %v3780_v27 }
0x119b   :  { %3400 = vmatprep.subr.bf16.mxu0 %v3644_v17  ;;  %3189 = vmatprep.mubr.msk.f32.mxu0 %vm3645_vm2, %v3646_v42 }
0x119c   :  { %3405 = vmatpush3.bf16.msra.mxu1 %v3843_v12  ;;  %3200 = vmatprep.mubr.msk.f32.mxu1 %vm3645_vm2, %v3646_v42 }
0x119d   :  { %3406 = vmatprep.subr.bf16.mxu1 %v3644_v17 }
0x119e   :  { %3402 = vmatpush3.bf16.msra.mxu0 %v3791_v35 }
0x119f   :  { %3409 = vmatprep.subr.bf16.mxu0 %v3644_v17 }
0x11a0   :  { %3408 = vmatpush3.bf16.msra.mxu1 %v3863_v20 }
0x11a1   :  { %3190 = vmatmul.mubr.msk.f32.vlgmr.msra.gmra.mrb[30].mxu0 %vm249_vm1, %v1899_v10  ;;  %3415 = vmatprep.subr.bf16.mxu1 %v3644_v17 }
0x11a2   :  { %3411 = vmatpush3.bf16.msra.mxu0 %v3854_v16  ;;  %3211 = vmatprep.mubr.msk.f32.mxu0 %vm3645_vm2, %v3646_v42 }
0x11a3   :  { %3412 = vmatprep.subr.bf16.mxu0 %v3644_v17 }
0x11a6   :  { %3414 = vmatpush3.bf16.msra.mxu0 %v3867_v21 }
0x11a7   :  { %3421 = vmatprep.subr.bf16.mxu0 %v3644_v17 }
0x126c   :  { %v1893_v11 = vpop.f32.mrb[28].mxu0 }
0x126d   :  { %v1968_v13 = vpop.f32.mrb[20].mxu1  ;;  %v3169_v14 = vpop.f32.mrb[29].mxu0 }
0x126e   :  { %v1969_v53 = vadd.f32 %v1968_v13, %v1893_v11  ;;  %v3180_v15 = vpop.f32.mrb[21].mxu1 }
0x1270   :  { %v1972_v18 = vadd.f32 %v3902_v30, %v1969_v53 }
0x1272   :  { %3552 = vtanh.f32 %v1972_v18  ;;  %v2776_v28 = vmul.f32 -1.442695, %v1972_v18 }
0x1274   :  { %v2063_v22 = vpop.f32.mrb[30].mxu0 }
0x1275   :  { %v2067_v23 = vadd.f32 %v2063_v22, %v371_v19  ;;  %v3191_v24 = vpop.f32.mrb[31].mxu0 }
0x1277   :  { %3554 = vtanh.f32 %v2067_v23  ;;  %v2778_v29 = vmul.f32 -1.442695, %v2067_v23 }
0x1278   :  { %3556 = vpow2.f32 %v2776_v28 }
0x1279   :  { %3558 = vpow2.f32 %v2778_v29 }
0x127c   :  { %v3553_v25 = vpop.eup %3552 }
0x127d   :  { %1982 = vrot.lane.b32.xlu0 %v3553_v25, %s3647_s29 }
0x1281   :  { %v3555_v26 = vpop.eup %3554 }
0x1282   :  { %2077 = vrot.lane.b32.xlu1 %v3555_v26, %s3647_s29  ;;  %v3557_v31 = vpop.eup %3556 }
0x1283   :  { %v1976_v32 = vadd.f32 1.0, %v3557_v31  ;;  %v3559_v33 = vpop.eup %3558 }
0x1284   :  { %v2071_v34 = vadd.f32 1.0, %v3559_v33 }
0x1285   :  { %3560 = vrcp.f32 %v1976_v32 }
0x1286   :  { %3562 = vrcp.f32 %v2071_v34 }
0x128f   :  { %v3561_v63 = vpop.eup %3560 }
0x1290   :  { %v3563_v37 = vpop.eup %3562  ;;  %v1980_v40 = vmul.f32 %v3561_v63, %v4070_v2 }
0x1291   :  { %v2075_v44 = vmul.f32 %v3563_v37, %v4072_v3 }
0x12ef   :  { %v1983_v36 = vpop.permute.xlu0 %1982 }
0x12f0   :  { %v1985_v54 = vmul.f32 %v3561_v63, %v1983_v36 }
0x12f2   :  { %1987 = vrot.lane.b32.xlu0 %v1985_v54, %s3648_s30 }
0x12f4   :  { %v2078_v38 = vpop.permute.xlu1 %2077 }
0x12f5   :  { %v2080_v39 = vmul.f32 %v3563_v37, %v2078_v38 }
0x12f7   :  { %2082 = vrot.lane.b32.xlu1 %v2080_v39, %s3648_s30 }
0x1364   :  { %v1988_v41 = vpop.permute.xlu0 %1987 }
0x1365   :  { %v4109_v43 = vadd.f32 %v1988_v41, %v1980_v40 }
0x1367   :  { %3564 = vtanh.f32 %v4109_v43 }
0x1369   :  { %v2083_v45 = vpop.permute.xlu1 %2082 }
0x136a   :  { %v4113_v46 = vadd.f32 %v2083_v45, %v2075_v44 }
0x136c   :  { %3566 = vtanh.f32 %v4113_v46 }
0x1371   :  { %v3565_v47 = vpop.eup %3564 }
0x1372   :  { %1993 = vrot.lane.b32.xlu0 %v3565_v47, %s3647_s29  ;;  %v2538_v47 = vld [vmem:[%s4221_s6 + $0x8] sm:$0xff] }
0x1376   :  { %v3567_v59 = vpop.eup %3566 }
0x1377   :  { %2088 = vrot.lane.b32.xlu1 %v3567_v59, %s3647_s29  ;;  %v2539_v59 = vld [vmem:[%s4221_s6 + $0x10] sm:$0xff] }
0x13e4   :  { %v1994_v48 = vpop.permute.xlu0 %1993 }
0x13e5   :  { %v1996_v49 = vmul.f32 %v3561_v63, %v1994_v48 }
0x13e7   :  { %2093 = vrot.lane.b32.xlu0 %v1996_v49, %s3648_s30  ;;  %v2540_v49 = vld [vmem:[%s4221_s6 + $0x18] sm:$0xff] }
0x13e9   :  { %v2089_v50 = vpop.permute.xlu1 %2088 }
0x13ea   :  { %v2091_v51 = vmul.f32 %v3563_v37, %v2089_v50  ;;  %v3437_v50 = vpack.c.bf16 %v2540_v49, %v2539_v59 }
0x13ec   :  { %2168 = vrot.lane.b32.xlu1 %v2091_v51, %s3648_s30 }
0x1459   :  { %v2094_v55 = vpop.permute.xlu0 %2093 }
0x145a   :  { %3201 = vmatmul.mubr.msk.f32.vlgmr.msra.gmra.mrb[22].mxu1 %vm249_vm1, %v2094_v55  ;;  %v2624_v55 = vld [vmem:[%s4223_s8] sm:$0xff] }
0x145b   :  { %3417 = vmatpush3.bf16.msra.mxu1 %v3780_v27  ;;  %3222 = vmatprep.mubr.msk.f32.mxu1 %vm3645_vm2, %v3646_v42 }
0x145c   :  { %3418 = vmatprep.subr.bf16.mxu1 %v3644_v17 }
0x145e   :  { %v2169_v56 = vpop.permute.xlu1 %2168 }
0x145f   :  { %3420 = vmatpush3.bf16.msra.mxu1 %v3791_v35  ;;  %3212 = vmatmul.mubr.msk.f32.vlgmr.msra.gmra.mrb[32].mxu0 %vm249_vm1, %v2169_v56 }
0x1460   :  { %3427 = vmatprep.subr.bf16.mxu1 %v3644_v17  ;;  %3423 = vmatpush3.bf16.msra.mxu0 %v3843_v12 }
0x1461   :  { %3424 = vmatprep.subr.bf16.mxu0 %v3644_v17  ;;  %3233 = vmatprep.mubr.msk.f32.mxu0 %vm3645_vm2, %v3646_v42 }
0x1462   :  { %3223 = vmatmul.mubr.msk.f32.vlgmr.msra.gmra.mrb[24].mxu1 %vm249_vm1, %v2169_v56  ;;  %v2625_v56 = vld [vmem:[%s4223_s8 + $0x8] sm:$0xff] }
0x1463   :  { %3429 = vmatpush3.bf16.msra.mxu1 %v3854_v16  ;;  %3244 = vmatprep.mubr.msk.f32.mxu1 %vm3645_vm2, %v3646_v42  ;;  %v376_v16 = vadd.f32 %v3826_v62, %v3814_v52 }
0x1464   :  { %3430 = vmatprep.subr.bf16.mxu1 %v3644_v17  ;;  %3426 = vmatpush3.bf16.msra.mxu0 %v3863_v20 }
0x1465   :  { %3433 = vmatprep.subr.bf16.mxu0 %v3644_v17 }
0x1467   :  { %3432 = vmatpush3.bf16.msra.mxu1 %v3867_v21 }
0x1468   :  { %3439 = vmatprep.subr.bf16.mxu1 %v3644_v17 }
0x152d   :  { %v2163_v27 = vpop.f32.mrb[22].mxu1 }
0x152e   :  { %v3202_v35 = vpop.f32.mrb[23].mxu1 }
0x152f   :  { %v3440_v35 = vpack.c.bf16 %v2625_v56, %v2624_v55 }
0x1532   :  { %v2238_v12 = vpop.f32.mrb[32].mxu0 }
0x1533   :  { %v2239_v57 = vadd.f32 %v2238_v12, %v2163_v27  ;;  %v3213_v58 = vpop.f32.mrb[33].mxu0  ;;  %v2626_v27 = vld [vmem:[%s4223_s8 + $0x10] sm:$0xff]  ;;  %v2627_v12 = vld [vmem:[%s4223_s8 + $0x18] sm:$0xff] }
0x1534   :  { %v2628_v58 = vld [vmem:[%s4223_s8 + $0x20] sm:$0xff] }
0x1535   :  { %v2242_v61 = vadd.f32 %v3902_v30, %v2239_v57  ;;  %v2333_v0 = vpop.f32.mrb[24].mxu1  ;;  %v3443_v57 = vpack.c.bf16 %v2627_v12, %v2626_v27 }
0x1536   :  { %v2337_v1 = vadd.f32 %v2333_v0, %v376_v16  ;;  %v3224_v2 = vpop.f32.mrb[25].mxu1  ;;  %v2629_v16 = vld [vmem:[%s4223_s8 + $0x28] sm:$0xff] }
0x1537   :  { %3568 = vtanh.f32 %v2242_v61  ;;  %v2781_v21 = vmul.f32 -1.442695, %v2242_v61  ;;  %v3446_v61 = vpack.c.bf16 %v2629_v16, %v2628_v58 }
0x1538   :  { %3570 = vtanh.f32 %v2337_v1  ;;  %v2783_v4 = vmul.f32 -1.442695, %v2337_v1 }
0x1539   :  { %3572 = vpow2.f32 %v2781_v21 }
0x153a   :  { %3574 = vpow2.f32 %v2783_v4  ;;  %v2787_v4 = vld [vmem:[%s4222_s7] ss:$0 sm:$0xff] }
0x1541   :  { %v3569_v20 = vpop.eup %3568 }
0x1542   :  { %v3571_v3 = vpop.eup %3570  ;;  %2252 = vrot.lane.b32.xlu0 %v3569_v20, %s3647_s29  ;;  %v2630_v20 = vld [vmem:[%s4223_s8 + $0x30] sm:$0xff] }
0x1543   :  { %2347 = vrot.lane.b32.xlu1 %v3571_v3, %s3647_s29  ;;  %v3573_v5 = vpop.eup %3572  ;;  %v2631_v3 = vld [vmem:[%s4223_s8 + $0x38] sm:$0xff] }
0x1544   :  { %v3575_v60 = vpop.eup %3574  ;;  %v2246_v52 = vadd.f32 1.0, %v3573_v5  ;;  %v3449_v21 = vpack.c.bf16 %v2631_v3, %v2630_v20 }
0x1545   :  { %v2341_v62 = vadd.f32 1.0, %v3575_v60 }
0x1546   :  { %3576 = vrcp.f32 %v2246_v52 }
0x1547   :  { %3578 = vrcp.f32 %v2341_v62  ;;  %v2789_v62 = vld [vmem:[%s4224_s9] ss:$0 sm:$0xff] }
0x1550   :  { %v3577_v6 = vpop.eup %3576 }
0x1551   :  { %v3579_v8 = vpop.eup %3578  ;;  %v2250_v13 = vmul.f32 %v3577_v6, %v4109_v43 }
0x1552   :  { %v2345_v14 = vmul.f32 %v3579_v8, %v4113_v46 }
0x15b4   :  { %v2253_v7 = vpop.permute.xlu0 %2252 }
0x15b5   :  { %v2348_v9 = vpop.permute.xlu1 %2347  ;;  %v2255_v10 = vmul.f32 %v3577_v6, %v2253_v7 }
0x15b6   :  { %v2350_v11 = vmul.f32 %v3579_v8, %v2348_v9 }
0x15b7   :  { %2257 = vrot.lane.b32.xlu0 %v2255_v10, %s3648_s30 }
0x15b8   :  { %2352 = vrot.lane.b32.xlu1 %v2350_v11, %s3648_s30 }
0x1629   :  { %v2258_v53 = vpop.permute.xlu0 %2257 }
0x162a   :  { %v2353_v15 = vpop.permute.xlu1 %2352  ;;  %v2260_v18 = vadd.f32 %v2258_v53, %v2250_v13 }
0x162b   :  { %v2355_v19 = vadd.f32 %v2353_v15, %v2345_v14 }
0x162c   :  { %3580 = vtanh.f32 %v2260_v18 }
0x162d   :  { %3582 = vtanh.f32 %v2355_v19 }
0x1636   :  { %v3581_v22 = vpop.eup %3580 }
0x1637   :  { %v3583_v23 = vpop.eup %3582  ;;  %2263 = vrot.lane.b32.xlu0 %v3581_v22, %s3647_s29 }
0x1638   :  { %2358 = vrot.lane.b32.xlu1 %v3583_v23, %s3647_s29 }
0x16a9   :  { %v2264_v24 = vpop.permute.xlu0 %2263 }
0x16aa   :  { %v2359_v25 = vpop.permute.xlu1 %2358  ;;  %v2266_v26 = vmul.f32 %v3577_v6, %v2264_v24 }
0x16ab   :  { %v2361_v28 = vmul.f32 %v3579_v8, %v2359_v25 }
0x16ac   :  { %2363 = vrot.lane.b32.xlu0 %v2266_v26, %s3648_s30 }
0x16ad   :  { %2438 = vrot.lane.b32.xlu1 %v2361_v28, %s3648_s30 }
0x171e   :  { %v2364_v29 = vpop.permute.xlu0 %2363 }
0x171f   :  { %v2439_v31 = vpop.permute.xlu1 %2438  ;;  %3234 = vmatmul.mubr.msk.f32.vlgmr.msra.gmra.mrb[34].mxu0 %vm249_vm1, %v2364_v29 }
0x1720   :  { %3245 = vmatmul.mubr.msk.f32.vlgmr.msra.gmra.mrb[26].mxu1 %vm249_vm1, %v2439_v31  ;;  %3255 = vmatprep.mubr.msk.f32.mxu0 %vm3645_vm2, %v3646_v42 }
0x1721   :  { %3274 = vmatprep.mubr.msk.f32.mxu1 %vm3645_vm2, %v3646_v42  ;;  %3441 = vmatpush3.bf16.msra.mxu1 %v3440_v35 }
0x1722   :  { %3442 = vmatprep.subr.bf16.mxu1 %v3644_v17 }
0x1725   :  { %3444 = vmatpush3.bf16.msra.mxu1 %v3443_v57 }
0x1726   :  { %3445 = vmatprep.subr.bf16.mxu1 %v3644_v17 }
0x1729   :  { %3447 = vmatpush3.bf16.msra.mxu1 %v3446_v61 }
0x172a   :  { %3448 = vmatprep.subr.bf16.mxu1 %v3644_v17 }
0x172d   :  { %3450 = vmatpush3.bf16.msra.mxu1 %v3449_v21 }
0x17f2   :  { %v2433_v32 = vpop.f32.mrb[34].mxu0 }
0x17f3   :  { %v2508_v33 = vpop.f32.mrb[26].mxu1  ;;  %v3235_v34 = vpop.f32.mrb[35].mxu0 }
0x17f4   :  { %v2509_v63 = vadd.f32 %v2508_v33, %v2433_v32  ;;  %v3246_v36 = vpop.f32.mrb[27].mxu1 }
0x17f6   :  { %v2512_v54 = vadd.f32 %v3902_v30, %v2509_v63  ;;  %v2537_v30 = vld [vmem:[%s4221_s6] sm:$0xff] }
0x17f7   :  { %v3434_v48 = vpack.c.bf16 %v2538_v47, %v2537_v30 }
0x17f8   :  { %3584 = vtanh.f32 %v2512_v54  ;;  %v2786_v38 = vmul.f32 -1.442695, %v2512_v54 }
0x17f9   :  { %3435 = vmatpush3.bf16.msra.mxu0 %v3434_v48 }
0x17fa   :  { %3586 = vpow2.f32 %v2786_v38  ;;  %3436 = vmatprep.subr.bf16.mxu0 %v3644_v17 }
0x17fd   :  { %3438 = vmatpush3.bf16.msra.mxu0 %v3437_v50 }
0x1802   :  { %v3585_v37 = vpop.eup %3584 }
0x1803   :  { %2522 = vrot.lane.b32.xlu0 %v3585_v37, %s3647_s29 }
0x1804   :  { %v3587_v39 = vpop.eup %3586 }
0x1805   :  { %v2516_v40 = vadd.f32 1.0, %v3587_v39 }
0x1807   :  { %3588 = vrcp.f32 %v2516_v40 }
0x1811   :  { %v3589_v41 = vpop.eup %3588 }
0x1812   :  { %v2520_v42 = vmul.f32 %v3589_v41, %v2260_v18 }
0x1875   :  { %v2523_v43 = vpop.permute.xlu0 %2522 }
0x1876   :  { %v2525_v44 = vmul.f32 %v3589_v41, %v2523_v43 }
0x1878   :  { %2527 = vrot.lane.b32.xlu1 %v2525_v44, %s3648_s30 }
0x18ea   :  { %v2528_v45 = vpop.permute.xlu1 %2527 }
0x18eb   :  { %v2530_v46 = vadd.f32 %v2528_v45, %v2520_v42 }
0x18ed   :  { %3590 = vtanh.f32 %v2530_v46 }
0x18f7   :  { %v3591_v51 = vpop.eup %3590 }
0x18f8   :  { %2533 = vrot.lane.b32.xlu0 %v3591_v51, %s3647_s29 }
0x196a   :  { %v2534_v0 = vpop.permute.xlu0 %2533 }
0x196b   :  { %v2536_v1 = vmul.f32 %v3589_v41, %v2534_v0 }
0x196d   :  { %2549 = vrot.lane.b32.xlu1 %v2536_v1, %s3648_s30 }
0x19df   :  { %v2550_v2 = vpop.permute.xlu1 %2549 }
0x19e0   :  { %3256 = vmatmul.mubr.msk.f32.vlgmr.msra.gmra.mrb[36].mxu0 %vm249_vm1, %v2550_v2 }
0x1ab3   :  { %v2619_v17 = vpop.f32.mrb[36].mxu0 }
0x1ab4   :  { %v2620_v5 = vadd.f32 %v2787_v4, %v2619_v17  ;;  %v3257_v60 = vpop.f32.mrb[37].mxu0 }
0x1ab6   :  { %v2623_v52 = vmax.f32 %v2620_v5, 0.0 }
0x1ab8   :  { %3275 = vmatmul.mubr.msk.f32.vlgmr.msra.gmra.mrb[28].mxu1 %vm2639_vm3, %v2623_v52 }
0x1b8b   :  { %v2709_v6 = vpop.f32.mrb[28].mxu1 }
0x1b8c   :  { %v2710_v7 = vadd.f32 %v2789_v62, %v2709_v6  ;;  %v3276_v8 = vpop.f32.mrb[29].mxu1 }
0x1b8e   :  { %2714 = vst.msk [vmem:[%s4225_s10] sm:$0xff] %vm2713_vm4, %v2710_v7 }
0x1b8f   :  { %2719 = vsyncpa [#allocation3], 1 }
0x1b90   :  { %2720 = vsyncpa [#allocation5], 1 }

</bundles_post_ra>
